<compile_context>
chip_gen: v6e
topology: v6e:2x2x1
jax: 0.10.0
libtpu: 0.0.40
codegen_flags: <defaults>
</compile_context>

<pallas_src>
import jax
import jax.numpy as jnp
from jax.experimental import pallas as pl
from jax.experimental.pallas import tpu as pltpu

INPUT_DIMS = 32
OUTPUT_DIMS = 16
OUT_PAD = 128            # lane-dense output slab; sliced to OUTPUT_DIMS outside
HIDDEN = 300
VEC_PAD = 384            # lane padding for the packed (1,F) vector slab
BN_EPS = 1e-5
LEAKY_SLOPE = 0.2

_VMEM_RESIDENCY_CAP = 48 * 1024 * 1024   # headroom under v7x's 64 MiB VMEM


def _has_bf16_vpu():
    """v6e/v7x VPUs have native bf16 lanes; v2..v5 do not (keep affine f32)."""
    try:
        kind = jax.devices()[0].device_kind.lower()
    except Exception:
        return True
    return not any(t in kind for t in ("v2", "v3", "v4", "v5"))


def _working_set_bytes(Bp):
    """Rough VMEM working-set estimate for the single-instance kernel."""
    weights = 2 * (INPUT_DIMS * HIDDEN + 2 * HIDDEN * HIDDEN + HIDDEN * OUT_PAD)
    vecs = 8 * VEC_PAD * 4
    acts = Bp * (INPUT_DIMS * 4 + OUT_PAD * 4 + HIDDEN * (3 * 4 + 2 * 2))
    return weights + vecs + acts


def _make_generator_kernel(B, Bp, use_bf16_affine):
    inv_b = 1.0 / B
    need_mask = Bp != B
    affine_dtype = jnp.bfloat16 if use_bf16_affine else jnp.float32

    def kernel(x_ref, w1_ref, w2_ref, w3_ref, w4_ref, vec_ref, o_ref):
        vec = vec_ref[...]                          # (8, VEC_PAD) f32, tiny
        g1, be1 = vec[0:1, :HIDDEN], vec[1:2, :HIDDEN]
        g2, be2 = vec[2:3, :HIDDEN], vec[3:4, :HIDDEN]
        g3, be3 = vec[4:5, :HIDDEN], vec[5:6, :HIDDEN]
        b4 = vec[6:7, :OUT_PAD]

        if need_mask:
            rows = jax.lax.broadcasted_iota(jnp.int32, (Bp, 1), 0)
            row_w = jnp.where(rows < B, inv_b, 0.0).astype(jnp.float32)
        else:
            row_w = None

        def bn_lrelu(h, gamma, beta):
            # Training-mode BatchNorm1d (batch stats, biased variance) fused
            # into one scale/shift affine, then LeakyReLU(0.2).
            # Single-pass var = E[h^2] - E[h]^2 is safe here: pre-BN
            # activations are ~zero-mean for this model, so no cancellation.
            if need_mask:
                hw = h * row_w                      # mask pad rows, pre-scale 1/B
                mean = jnp.sum(hw, axis=0, keepdims=True)
                msq = jnp.sum(hw * h, axis=0, keepdims=True)
            else:
                mean = jnp.sum(h, axis=0, keepdims=True) * inv_b
                msq = jnp.sum(h * h, axis=0, keepdims=True) * inv_b
            var = msq - mean * mean
            scale = gamma * jax.lax.rsqrt(var + BN_EPS)
            shift = beta - mean * scale
            # Post-stats affine + LeakyReLU in bf16 where the VPU supports it;
            # the result feeds a bf16 MXU matmul anyway.
            hn = (h.astype(affine_dtype) * scale.astype(affine_dtype)
                  + shift.astype(affine_dtype))
            return jnp.maximum(hn, LEAKY_SLOPE * hn)

        def mm(a, w_ref):
            # bf16 MXU matmul, f32 accumulation.
            return jnp.dot(a.astype(jnp.bfloat16), w_ref[...],
                           preferred_element_type=jnp.float32)

        h = mm(x_ref[...], w1_ref)                  # Linear(in,300,bias=False)
        h = bn_lrelu(h, g1, be1)
        h = mm(h, w2_ref)                           # bias cancelled by BN
        h = bn_lrelu(h, g2, be2)
        h = mm(h, w3_ref)                           # bias cancelled by BN
        h = bn_lrelu(h, g3, be3)
        o_ref[...] = mm(h, w4_ref) + b4             # lane-dense padded output

    return kernel


def generator_forward(x, params, use_bf16_affine=None):
    """x: (B, INPUT_DIMS) f32. Returns (B, OUTPUT_DIMS) f32."""
    B, in_dim = x.shape
    assert in_dim == INPUT_DIMS
    if use_bf16_affine is None:
        use_bf16_affine = _has_bf16_vpu()

    # Pad batch to a sublane multiple; BN stats are masked to the real B rows.
    Bp = max(8, ((B + 7) // 8) * 8)
    if Bp != B:
        x = jnp.pad(x, ((0, Bp - B), (0, 0)))

    est = _working_set_bytes(Bp)
    if est > _VMEM_RESIDENCY_CAP:
        # TODO(synk): gridded two-pass (stats, then normalize) variant for
        # batches exceeding single-instance VMEM residency (v7x: 64 MiB).
        raise NotImplementedError(
            f"batch {B} exceeds the single-kernel VMEM residency cap")
    compiler_params = None
    if est > 12 * 1024 * 1024:      # v5e's default scoped VMEM limit is 16 MiB
        compiler_params = pltpu.CompilerParams(
            vmem_limit_bytes=min(int(est * 1.5) + (4 << 20),
                                 _VMEM_RESIDENCY_CAP))

    kernel = _make_generator_kernel(B, Bp, use_bf16_affine)
    args = (x, params["w1"], params["w2"], params["w3"], params["w4"],
            params["vecs"])
    vmem = lambda: pl.BlockSpec(memory_space=pltpu.MemorySpace.VMEM)

    out = pl.pallas_call(
        kernel,
        out_shape=jax.ShapeDtypeStruct((Bp, OUT_PAD), jnp.float32),
        in_specs=[vmem() for _ in args],
        out_specs=vmem(),
        compiler_params=compiler_params,
        # No grid: the whole (tiny) problem is resident in VMEM; weights are
        # DMA'd once per call and reused by every batch row.
    )(*args)

    return out[:B, :OUTPUT_DIMS]


def init_params(key):
    """Deterministic synthetic parameters matching the module's shapes.

    Linear weights are stored transposed (in, out) and cast to bf16; the final
    layer is zero-padded from OUTPUT_DIMS=16 to OUT_PAD=128 lanes.  All small
    per-feature vectors (BN gamma/beta x3, final bias) are packed into one
    (8, VEC_PAD) f32 slab so the kernel gets them in a single DMA.
    """
    ks = jax.random.split(key, 7)

    def lin_w(k, fan_in, fan_out):
        bound = 1.0 / (fan_in ** 0.5)
        return jax.random.uniform(k, (fan_in, fan_out), jnp.float32, -bound, bound)

    def lin_b(k, fan_in, fan_out):
        bound = 1.0 / (fan_in ** 0.5)
        return jax.random.uniform(k, (fan_out,), jnp.float32, -bound, bound)

    w4 = jnp.pad(lin_w(ks[5], HIDDEN, OUTPUT_DIMS),
                 ((0, 0), (0, OUT_PAD - OUTPUT_DIMS)))
    b4 = jnp.pad(lin_b(ks[6], HIDDEN, OUTPUT_DIMS), (0, OUT_PAD - OUTPUT_DIMS))

    vecs = jnp.zeros((8, VEC_PAD), jnp.float32)
    vecs = vecs.at[0, :HIDDEN].set(jnp.ones((HIDDEN,), jnp.float32))   # g1
    vecs = vecs.at[1, :HIDDEN].set(jnp.zeros((HIDDEN,), jnp.float32))  # be1
    vecs = vecs.at[2, :HIDDEN].set(jnp.ones((HIDDEN,), jnp.float32))   # g2
    vecs = vecs.at[3, :HIDDEN].set(jnp.zeros((HIDDEN,), jnp.float32))  # be2
    vecs = vecs.at[4, :HIDDEN].set(jnp.ones((HIDDEN,), jnp.float32))   # g3
    vecs = vecs.at[5, :HIDDEN].set(jnp.zeros((HIDDEN,), jnp.float32))  # be3
    vecs = vecs.at[6, :OUT_PAD].set(b4)                                # b4

    return {
        "w1": lin_w(ks[0], INPUT_DIMS, HIDDEN).astype(jnp.bfloat16),
        "w2": lin_w(ks[1], HIDDEN, HIDDEN).astype(jnp.bfloat16),
        "w3": lin_w(ks[3], HIDDEN, HIDDEN).astype(jnp.bfloat16),
        "w4": w4.astype(jnp.bfloat16),
        "vecs": vecs,
        # b2/b3 exist in the PyTorch module but are mathematically cancelled
        # by the following training-mode BatchNorm; kept only for the f32
        # semantic reference (never DMA'd to the kernel).
        "b2": lin_b(ks[2], HIDDEN, HIDDEN),
        "b3": lin_b(ks[4], HIDDEN, HIDDEN),
    }


def generator_reference(x, p, use_bf16_affine):
    """Pure-JAX reference with the SAME math as the kernel (bf16 weights,
    f32 stats, bf16/f32 post-stats affine, b2/b3 omitted)."""
    B = x.shape[0]
    affine_dtype = jnp.bfloat16 if use_bf16_affine else jnp.float32
    v = p["vecs"]
    g = [v[0, :HIDDEN], v[2, :HIDDEN], v[4, :HIDDEN]]
    be = [v[1, :HIDDEN], v[3, :HIDDEN], v[5, :HIDDEN]]
    b4 = v[6, :OUT_PAD]

    def mm(a, w):
        return jnp.dot(a.astype(jnp.bfloat16), w,
                       preferred_element_type=jnp.float32)

    def bn_lrelu(h, gamma, beta):
        mean = jnp.sum(h, axis=0, keepdims=True) * (1.0 / B)
        msq = jnp.sum(h * h, axis=0, keepdims=True) * (1.0 / B)
        var = msq - mean * mean
        scale = gamma * jax.lax.rsqrt(var + BN_EPS)
        shift = beta - mean * scale
        hn = (h.astype(affine_dtype) * scale.astype(affine_dtype)
              + shift.astype(affine_dtype))
        return jnp.maximum(hn, LEAKY_SLOPE * hn)

    h = mm(x, p["w1"])
    h = bn_lrelu(h, g[0], be[0])
    h = mm(h, p["w2"])
    h = bn_lrelu(h, g[1], be[1])
    h = mm(h, p["w3"])
    h = bn_lrelu(h, g[2], be[2])
    return (mm(h, p["w4"]) + b4)[:, :OUTPUT_DIMS]


def generator_reference_f32(x, p):
    """Full module semantics in f32 (bf16-stored weights upcast), INCLUDING
    the layer-2/3 biases -- shows that dropping them in the kernel is exact."""
    v = p["vecs"]
    w1 = p["w1"].astype(jnp.float32)
    w2 = p["w2"].astype(jnp.float32)
    w3 = p["w3"].astype(jnp.float32)
    w4 = p["w4"].astype(jnp.float32)

    def bn_lrelu(h, gamma, beta):
        mean = jnp.mean(h, axis=0, keepdims=True)
        var = jnp.mean((h - mean) ** 2, axis=0, keepdims=True)  # biased
        hn = (h - mean) * jax.lax.rsqrt(var + BN_EPS) * gamma + beta
        return jnp.maximum(hn, LEAKY_SLOPE * hn)

    h = x @ w1
    h = bn_lrelu(h, v[0, :HIDDEN], v[1, :HIDDEN])
    h = h @ w2 + p["b2"]
    h = bn_lrelu(h, v[2, :HIDDEN], v[3, :HIDDEN])
    h = h @ w3 + p["b3"]
    h = bn_lrelu(h, v[4, :HIDDEN], v[5, :HIDDEN])
    return (h @ w4 + v[6, :OUT_PAD])[:, :OUTPUT_DIMS]


if __name__ == "__main__":
    key = jax.random.PRNGKey(0)
    k_x, k_p = jax.random.split(key)
    params = init_params(k_p)
    use_bf16_affine = _has_bf16_vpu()

    # B=64: sublane-aligned fast path.  B=6: row padding + masked BN stats.
    for B in (64, 6):
        x = jax.random.normal(jax.random.fold_in(k_x, B), (B, INPUT_DIMS),
                              jnp.float32)
        out = jax.block_until_ready(generator_forward(x, params, use_bf16_affine))
        assert out.shape == (B, OUTPUT_DIMS), out.shape

        ref = generator_reference(x, params, use_bf16_affine)
        err = float(jnp.max(jnp.abs(out - ref)))
        assert err < 5e-3, f"kernel vs same-math reference: {err}"

        # Loose check vs full f32 module semantics (with b2/b3): bounds the
        # total bf16 drift and validates the bias-cancellation simplification.
        ref32 = generator_reference_f32(x, params)
        err32 = float(jnp.max(jnp.abs(out - ref32)))
        assert err32 < 0.15, f"kernel vs f32 module semantics: {err32}"

    print("KERNEL_OK")
</pallas_src>

<mosaic_0001>
module attributes {stable_mosaic.version = 11 : i64} {
  func.func @kernel(%arg0: memref<64x32xf32, #tpu.memory_space<vmem>>, %arg1: memref<32x300xbf16, #tpu.memory_space<vmem>>, %arg2: memref<300x300xbf16, #tpu.memory_space<vmem>>, %arg3: memref<300x300xbf16, #tpu.memory_space<vmem>>, %arg4: memref<300x128xbf16, #tpu.memory_space<vmem>>, %arg5: memref<8x384xf32, #tpu.memory_space<vmem>>, %arg6: memref<64x128xf32, #tpu.memory_space<vmem>>) attributes {dimension_semantics = [], scalar_prefetch = 0 : i64, scratch_operands = 0 : i64, tpu.core_type = #tpu.core_type<tc>} {
    %c0 = arith.constant 0 : index
    %c0_0 = arith.constant 0 : index
    %0 = vector.load %arg5[%c0, %c0_0] : memref<8x384xf32, #tpu.memory_space<vmem>>, vector<8x384xf32>
    %1 = vector.extract_strided_slice %0 {offsets = [0, 0], sizes = [1, 300], strides = [1, 1]} : vector<8x384xf32> to vector<1x300xf32>
    %2 = vector.extract_strided_slice %0 {offsets = [1, 0], sizes = [1, 300], strides = [1, 1]} : vector<8x384xf32> to vector<1x300xf32>
    %3 = vector.extract_strided_slice %0 {offsets = [2, 0], sizes = [1, 300], strides = [1, 1]} : vector<8x384xf32> to vector<1x300xf32>
    %4 = vector.extract_strided_slice %0 {offsets = [3, 0], sizes = [1, 300], strides = [1, 1]} : vector<8x384xf32> to vector<1x300xf32>
    %5 = vector.extract_strided_slice %0 {offsets = [4, 0], sizes = [1, 300], strides = [1, 1]} : vector<8x384xf32> to vector<1x300xf32>
    %6 = vector.extract_strided_slice %0 {offsets = [5, 0], sizes = [1, 300], strides = [1, 1]} : vector<8x384xf32> to vector<1x300xf32>
    %7 = vector.extract_strided_slice %0 {offsets = [6, 0], sizes = [1, 128], strides = [1, 1]} : vector<8x384xf32> to vector<1x128xf32>
    %c0_1 = arith.constant 0 : index
    %c0_2 = arith.constant 0 : index
    %8 = vector.load %arg0[%c0_1, %c0_2] : memref<64x32xf32, #tpu.memory_space<vmem>>, vector<64x32xf32>
    %9 = arith.truncf %8 : vector<64x32xf32> to vector<64x32xbf16>
    %c0_3 = arith.constant 0 : index
    %c0_4 = arith.constant 0 : index
    %10 = vector.load %arg1[%c0_3, %c0_4] : memref<32x300xbf16, #tpu.memory_space<vmem>>, vector<32x300xbf16>
    %cst = arith.constant dense<0.000000e+00> : vector<64x300xf32>
    %11 = tpu.matmul %9, %10, %cst {dimension_numbers = #tpu.dot_dimension_numbers<[1], [0], [0], [1], [0, 0, 1, 1], [], []>} : vector<64x32xbf16>, vector<32x300xbf16>, vector<64x300xf32> -> vector<64x300xf32>
    %cst_5 = arith.constant dense<0.000000e+00> : vector<300xf32>
    %12 = vector.multi_reduction <add>, %11, %cst_5 [0] : vector<64x300xf32> to vector<300xf32>
    %13 = vector.shape_cast %12 : vector<300xf32> to vector<1x300xf32>
    %cst_6 = arith.constant 1.562500e-02 : f32
    %14 = vector.broadcast %cst_6 : f32 to vector<1x300xf32>
    %15 = arith.mulf %13, %14 : vector<1x300xf32>
    %16 = arith.mulf %11, %11 : vector<64x300xf32>
    %cst_7 = arith.constant dense<0.000000e+00> : vector<300xf32>
    %17 = vector.multi_reduction <add>, %16, %cst_7 [0] : vector<64x300xf32> to vector<300xf32>
    %18 = vector.shape_cast %17 : vector<300xf32> to vector<1x300xf32>
    %cst_8 = arith.constant 1.562500e-02 : f32
    %19 = vector.broadcast %cst_8 : f32 to vector<1x300xf32>
    %20 = arith.mulf %18, %19 : vector<1x300xf32>
    %21 = arith.mulf %15, %15 : vector<1x300xf32>
    %22 = arith.subf %20, %21 : vector<1x300xf32>
    %cst_9 = arith.constant 9.99999974E-6 : f32
    %23 = vector.broadcast %cst_9 : f32 to vector<1x300xf32>
    %24 = arith.addf %22, %23 : vector<1x300xf32>
    %25 = math.rsqrt %24 : vector<1x300xf32>
    %26 = arith.mulf %1, %25 : vector<1x300xf32>
    %27 = arith.mulf %15, %26 : vector<1x300xf32>
    %28 = arith.subf %2, %27 : vector<1x300xf32>
    %29 = arith.truncf %11 : vector<64x300xf32> to vector<64x300xbf16>
    %30 = arith.truncf %26 : vector<1x300xf32> to vector<1x300xbf16>
    %31 = vector.broadcast %30 : vector<1x300xbf16> to vector<64x300xbf16>
    %32 = arith.mulf %29, %31 : vector<64x300xbf16>
    %33 = arith.truncf %28 : vector<1x300xf32> to vector<1x300xbf16>
    %34 = vector.broadcast %33 : vector<1x300xbf16> to vector<64x300xbf16>
    %35 = arith.addf %32, %34 : vector<64x300xbf16>
    %cst_10 = arith.constant 2.001950e-01 : bf16
    %36 = vector.broadcast %cst_10 : bf16 to vector<64x300xbf16>
    %37 = arith.mulf %36, %35 : vector<64x300xbf16>
    %38 = arith.maximumf %35, %37 : vector<64x300xbf16>
    %c0_11 = arith.constant 0 : index
    %c0_12 = arith.constant 0 : index
    %39 = vector.load %arg2[%c0_11, %c0_12] : memref<300x300xbf16, #tpu.memory_space<vmem>>, vector<300x300xbf16>
    %cst_13 = arith.constant dense<0.000000e+00> : vector<64x300xf32>
    %40 = tpu.matmul %38, %39, %cst_13 {dimension_numbers = #tpu.dot_dimension_numbers<[1], [0], [0], [1], [0, 0, 1, 1], [], []>} : vector<64x300xbf16>, vector<300x300xbf16>, vector<64x300xf32> -> vector<64x300xf32>
    %cst_14 = arith.constant dense<0.000000e+00> : vector<300xf32>
    %41 = vector.multi_reduction <add>, %40, %cst_14 [0] : vector<64x300xf32> to vector<300xf32>
    %42 = vector.shape_cast %41 : vector<300xf32> to vector<1x300xf32>
    %cst_15 = arith.constant 1.562500e-02 : f32
    %43 = vector.broadcast %cst_15 : f32 to vector<1x300xf32>
    %44 = arith.mulf %42, %43 : vector<1x300xf32>
    %45 = arith.mulf %40, %40 : vector<64x300xf32>
    %cst_16 = arith.constant dense<0.000000e+00> : vector<300xf32>
    %46 = vector.multi_reduction <add>, %45, %cst_16 [0] : vector<64x300xf32> to vector<300xf32>
    %47 = vector.shape_cast %46 : vector<300xf32> to vector<1x300xf32>
    %cst_17 = arith.constant 1.562500e-02 : f32
    %48 = vector.broadcast %cst_17 : f32 to vector<1x300xf32>
    %49 = arith.mulf %47, %48 : vector<1x300xf32>
    %50 = arith.mulf %44, %44 : vector<1x300xf32>
    %51 = arith.subf %49, %50 : vector<1x300xf32>
    %cst_18 = arith.constant 9.99999974E-6 : f32
    %52 = vector.broadcast %cst_18 : f32 to vector<1x300xf32>
    %53 = arith.addf %51, %52 : vector<1x300xf32>
    %54 = math.rsqrt %53 : vector<1x300xf32>
    %55 = arith.mulf %3, %54 : vector<1x300xf32>
    %56 = arith.mulf %44, %55 : vector<1x300xf32>
    %57 = arith.subf %4, %56 : vector<1x300xf32>
    %58 = arith.truncf %40 : vector<64x300xf32> to vector<64x300xbf16>
    %59 = arith.truncf %55 : vector<1x300xf32> to vector<1x300xbf16>
    %60 = vector.broadcast %59 : vector<1x300xbf16> to vector<64x300xbf16>
    %61 = arith.mulf %58, %60 : vector<64x300xbf16>
    %62 = arith.truncf %57 : vector<1x300xf32> to vector<1x300xbf16>
    %63 = vector.broadcast %62 : vector<1x300xbf16> to vector<64x300xbf16>
    %64 = arith.addf %61, %63 : vector<64x300xbf16>
    %cst_19 = arith.constant 2.001950e-01 : bf16
    %65 = vector.broadcast %cst_19 : bf16 to vector<64x300xbf16>
    %66 = arith.mulf %65, %64 : vector<64x300xbf16>
    %67 = arith.maximumf %64, %66 : vector<64x300xbf16>
    %c0_20 = arith.constant 0 : index
    %c0_21 = arith.constant 0 : index
    %68 = vector.load %arg3[%c0_20, %c0_21] : memref<300x300xbf16, #tpu.memory_space<vmem>>, vector<300x300xbf16>
    %cst_22 = arith.constant dense<0.000000e+00> : vector<64x300xf32>
    %69 = tpu.matmul %67, %68, %cst_22 {dimension_numbers = #tpu.dot_dimension_numbers<[1], [0], [0], [1], [0, 0, 1, 1], [], []>} : vector<64x300xbf16>, vector<300x300xbf16>, vector<64x300xf32> -> vector<64x300xf32>
    %cst_23 = arith.constant dense<0.000000e+00> : vector<300xf32>
    %70 = vector.multi_reduction <add>, %69, %cst_23 [0] : vector<64x300xf32> to vector<300xf32>
    %71 = vector.shape_cast %70 : vector<300xf32> to vector<1x300xf32>
    %cst_24 = arith.constant 1.562500e-02 : f32
    %72 = vector.broadcast %cst_24 : f32 to vector<1x300xf32>
    %73 = arith.mulf %71, %72 : vector<1x300xf32>
    %74 = arith.mulf %69, %69 : vector<64x300xf32>
    %cst_25 = arith.constant dense<0.000000e+00> : vector<300xf32>
    %75 = vector.multi_reduction <add>, %74, %cst_25 [0] : vector<64x300xf32> to vector<300xf32>
    %76 = vector.shape_cast %75 : vector<300xf32> to vector<1x300xf32>
    %cst_26 = arith.constant 1.562500e-02 : f32
    %77 = vector.broadcast %cst_26 : f32 to vector<1x300xf32>
    %78 = arith.mulf %76, %77 : vector<1x300xf32>
    %79 = arith.mulf %73, %73 : vector<1x300xf32>
    %80 = arith.subf %78, %79 : vector<1x300xf32>
    %cst_27 = arith.constant 9.99999974E-6 : f32
    %81 = vector.broadcast %cst_27 : f32 to vector<1x300xf32>
    %82 = arith.addf %80, %81 : vector<1x300xf32>
    %83 = math.rsqrt %82 : vector<1x300xf32>
    %84 = arith.mulf %5, %83 : vector<1x300xf32>
    %85 = arith.mulf %73, %84 : vector<1x300xf32>
    %86 = arith.subf %6, %85 : vector<1x300xf32>
    %87 = arith.truncf %69 : vector<64x300xf32> to vector<64x300xbf16>
    %88 = arith.truncf %84 : vector<1x300xf32> to vector<1x300xbf16>
    %89 = vector.broadcast %88 : vector<1x300xbf16> to vector<64x300xbf16>
    %90 = arith.mulf %87, %89 : vector<64x300xbf16>
    %91 = arith.truncf %86 : vector<1x300xf32> to vector<1x300xbf16>
    %92 = vector.broadcast %91 : vector<1x300xbf16> to vector<64x300xbf16>
    %93 = arith.addf %90, %92 : vector<64x300xbf16>
    %cst_28 = arith.constant 2.001950e-01 : bf16
    %94 = vector.broadcast %cst_28 : bf16 to vector<64x300xbf16>
    %95 = arith.mulf %94, %93 : vector<64x300xbf16>
    %96 = arith.maximumf %93, %95 : vector<64x300xbf16>
    %c0_29 = arith.constant 0 : index
    %c0_30 = arith.constant 0 : index
    %97 = vector.load %arg4[%c0_29, %c0_30] : memref<300x128xbf16, #tpu.memory_space<vmem>>, vector<300x128xbf16>
    %cst_31 = arith.constant dense<0.000000e+00> : vector<64x128xf32>
    %98 = tpu.matmul %96, %97, %cst_31 {dimension_numbers = #tpu.dot_dimension_numbers<[1], [0], [0], [1], [0, 0, 1, 1], [], []>} : vector<64x300xbf16>, vector<300x128xbf16>, vector<64x128xf32> -> vector<64x128xf32>
    %99 = vector.broadcast %7 : vector<1x128xf32> to vector<64x128xf32>
    %100 = arith.addf %98, %99 : vector<64x128xf32>
    %c0_32 = arith.constant 0 : index
    %c0_33 = arith.constant 0 : index
    %101 = vector.load %arg6[%c0_32, %c0_33] : memref<64x128xf32, #tpu.memory_space<vmem>>, vector<64x128xf32>
    tpu.vector_store %arg6[%c0_32, %c0_33], %100 {strides = array<i32>} : memref<64x128xf32, #tpu.memory_space<vmem>>, vector<64x128xf32>,
    return
  }
}

</mosaic_0001>

<bundles_post_ra>
// kernel: tpu_custom_call.1
= control target key start
LH: loop header
LB: loop body
LE: loop exit
PB: predicated region body
PF: predicated region fallthrough
CT: control target
= control target key end

     0   :  { %11 = vsyncpa [#allocation3], 0  ;;  %s4274_s0 = inlined_call_operand.vmem [shape: f32[64,32], index: 0, kind: input, shape index: {}]   ;;  %s4275_s1 = inlined_call_operand.vmem [shape: bf16[32,300], index: 1, kind: input, shape index: {}]   ;;  %s4276_s2 = inlined_call_operand.hbm [shape: bf16[300,300], index: 2, kind: input, shape index: {}]   ;;  %s4277_s3 = inlined_call_operand.hbm [shape: bf16[300,300], index: 3, kind: input, shape index: {}]   ;;  %s4278_s4 = inlined_call_operand.hbm [shape: bf16[300,128], index: 4, kind: input, shape index: {}]   ;;  %s4279_s5 = inlined_call_operand.vmem [shape: f32[8,384], index: 5, kind: input, shape index: {}]   ;;  %s4280_s6 = inlined_call_operand.hbm [shape: f32[64,128], index: 6, kind: output, shape index: {}]  }
   0x1   :  { %12 = vsyncpa [#allocation6], 0 }
   0x2   :  { %13 = vsyncpa [#allocation4], 0  ;;  %s3414_s21 = smov [#allocation5]   ;;  %s3415_s23 = smov [#allocation2]  }
   0x3   :  { %s35_s22 = sshll.u32 %s3414_s21, 4  ;;  %s23_s24 = sshll.u32 %s3415_s23, 4  ;;  %s36_s22 = int_to_ptr.vmem [resolvable:$true] %s35_s22  ;;  %s24_s24 = int_to_ptr.vmem [resolvable:$true] %s23_s24 }
   0x4   :  { %s3336_s25 = scalar_lea.vmem %s36_s22, 7296  ;;  %p3341_p1 = scmp.lt.s32.totalorder %s36_s22, %s36_s22 }
   0x5   :  { %p3337_p0 = scmp.ne.s32.totalorder %s36_s22, %s3336_s25  ;;  %p3342_p2 = scmp.lt.s32.totalorder %s3336_s25, %s3336_s25 }
   0x7   :  { %p3343_p3 = por %p3342_p2, %p3341_p1 }
   0x9   :  { %p3344_p4 = pnand %p3343_p3, %p3337_p0 }
   0xb   :  { %3347 = shalt.err (!%p3344_p4)
}
   0xc   :  { %s3416_s26 = smov 192   ;;  %s3417_s27 = smov 12  }
   0xd   :  { %41 = dma.hbm_to_vmem [thread:$0]  %s4277_s3, 7296, %s36_s22, [#allocation6], %s3416_s26, %s3416_s26, %s3417_s27  }
   0xe   :  { %s3356_s30 = scalar_lea.vmem %s24_s24, 7296  ;;  %p3361_p6 = scmp.lt.s32.totalorder %s24_s24, %s24_s24 }
   0xf   :  { %p3357_p5 = scmp.ne.s32.totalorder %s24_s24, %s3356_s30  ;;  %p3362_p7 = scmp.lt.s32.totalorder %s3356_s30, %s3356_s30 }
  0x11   :  { %p3363_p8 = por %p3362_p7, %p3361_p6 }
  0x13   :  { %p3364_p9 = pnand %p3363_p8, %p3357_p5 }
  0x15   :  { %3367 = shalt.err (!%p3364_p9)
}
  0x16   :  { %29 = dma.hbm_to_vmem [thread:$0]  %s4276_s2, 7296, %s24_s24, [#allocation3], %s3416_s26, %s3416_s26, %s3417_s27  }
  0x17   :  { %s3418_s9 = smov [#allocation7]  }
  0x18   :  { %s47_s10 = sshll.u32 %s3418_s9, 4  ;;  %s48_s10 = int_to_ptr.vmem [resolvable:$true] %s47_s10 }
  0x19   :  { %s3376_s11 = scalar_lea.vmem %s48_s10, 2432  ;;  %p3381_p11 = scmp.lt.s32.totalorder %s48_s10, %s48_s10 }
  0x1a   :  { %p3377_p10 = scmp.ne.s32.totalorder %s48_s10, %s3376_s11  ;;  %p3382_p12 = scmp.lt.s32.totalorder %s3376_s11, %s3376_s11 }
  0x1c   :  { %p3383_p13 = por %p3382_p12, %p3381_p11 }
  0x1e   :  { %p3384_p0 = pnand %p3383_p13, %p3377_p10 }
  0x20   :  { %3387 = shalt.err (!%p3384_p0)
}
  0x21   :  { %s3419_s3 = smov 64   ;;  %s3420_s12 = smov 4  }
  0x22   :  { %53 = dma.hbm_to_vmem [thread:$0]  %s4278_s4, 2432, %s48_s10, [#allocation6], %s3419_s3, %s3419_s3, %s3420_s12  }
  0x23   :  { %3408 = dma.done.wait [#allocation3], 7296  }
  0x24   :  { %3409 = vsyncadd [#allocation3], 4294960000 }
  0x25   :  { %3410 = dma.done.wait [#allocation6], 9728  }
  0x26   :  { %3411 = vsyncadd [#allocation6], 4294957568  ;;  %v3421_v0 = vmov 0   ;;  %v3128_v1 = vld [vmem:[%s4275_s1 + $0x1c] ss:$12 sps:$4 sm:$0xff]   ;;  %v70_v7 = vld [vmem:[%s4274_s0] sm:$0xff] }
  0x27   :  { %167 = vmatprep.mubr.bf16.mxu0 %v3421_v0  ;;  %v3130_v2 = vld [vmem:[%s4275_s1 + $0x20] ss:$12 sps:$4 sm:$0xff]   ;;  %147 = vmatprep.subr.bf16.mxu0 %v3128_v1  ;;  %v3131_v3 = vld [vmem:[%s4275_s1 + $0x18] ss:$12 sps:$4 sm:$0xff]   ;;  %v3134_v5 = vld [vmem:[%s4275_s1 + $0x8] ss:$12 sps:$4 sm:$0xff]  }
  0x28   :  { %3060 = vmatprep.subr.bf16.mxu1 %v3130_v2  ;;  %v3132_v4 = vld [vmem:[%s4275_s1 + $0x4] ss:$12 sps:$4 sm:$0xff]   ;;  %148 = vmatpush1.bf16.msra.mxu0 %v3131_v3  ;;  %v3135_v6 = vld [vmem:[%s4275_s1] ss:$12 sps:$4 sm:$0xff]   ;;  %v73_v10 = vld [vmem:[%s4274_s0 + $0x18] sm:$0xff]  ;;  %vm122_vm0 = vcmask 261120  }
  0x29   :  { %3061 = vmatpush3.bf16.msra.mxu1 %v3130_v2  ;;  %149 = vmatprep.subr.bf16.mxu0 %v3132_v4  ;;  %v71_v8 = vld [vmem:[%s4274_s0 + $0x8] sm:$0xff]  ;;  %v72_v9 = vld [vmem:[%s4274_s0 + $0x10] sm:$0xff]  ;;  %v74_v12 = vld [vmem:[%s4274_s0 + $0x20] sm:$0xff]  ;;  %vm928_vm1 = vcmask 1045504   ;;  %vm299_vm2 = vcmask 359424  }
  0x2a   :  { %3062 = vmatprep.subr.bf16.mxu1 %v3134_v5  ;;  %v78_v11 = vpack.c.bf16 %v71_v8, %v70_v7  ;;  %v75_v13 = vld [vmem:[%s4274_s0 + $0x28] sm:$0xff]  ;;  %v79_v14 = vpack.c.bf16 %v73_v10, %v72_v9  ;;  %v76_v16 = vld [vmem:[%s4274_s0 + $0x30] sm:$0xff]  ;;  %v77_v17 = vld [vmem:[%s4274_s0 + $0x38] sm:$0xff] }
  0x2b   :  { %v80_v15 = vpack.c.bf16 %v75_v13, %v74_v12  ;;  %v81_v18 = vpack.c.bf16 %v77_v17, %v76_v16  ;;  %v3138_v19 = vld [vmem:[#allocation2 + $0xac] ss:$12 sps:$4 sm:$0xff]   ;;  %v3136_v20 = vld [vmem:[#allocation2 + $0xa8] ss:$12 sps:$4 sm:$0xff]   ;;  %v3139_v22 = vld [vmem:[#allocation2 + $0x90] ss:$12 sps:$4 sm:$0xff]  }
  0x2c   :  { %150 = vmatpush1.bf16.msra.mxu0 %v3135_v6  ;;  %3064 = vmatprep.mubr.msk.bf16.mxu1 %vm122_vm0, %v78_v11  ;;  %v3141_v21 = vld [vmem:[#allocation2 + $0x94] ss:$12 sps:$4 sm:$0xff]   ;;  %v3144_v23 = vld [vmem:[#allocation2 + $0x7c] ss:$12 sps:$4 sm:$0xff]   ;;  %v3142_v24 = vld [vmem:[#allocation2 + $0x78] ss:$12 sps:$4 sm:$0xff]  }
  0x2d   :  { %3063 = vmatpush3.bf16.msra.mxu1 %v3134_v5  ;;  %938 = vmatprep.subr.bf16.mxu0 %v3138_v19  ;;  %v3147_v25 = vld [vmem:[#allocation2 + $0x64] ss:$12 sps:$4 sm:$0xff]   ;;  %v3145_v26 = vld [vmem:[#allocation2 + $0x60] ss:$12 sps:$4 sm:$0xff]   ;;  %v3148_v28 = vld [vmem:[#allocation2 + $0x48] ss:$12 sps:$4 sm:$0xff]  }
  0x2e   :  { %v3150_v27 = vld [vmem:[#allocation2 + $0x4c] ss:$12 sps:$4 sm:$0xff]   ;;  %v3153_v29 = vld [vmem:[#allocation2 + $0x34] ss:$12 sps:$4 sm:$0xff]   ;;  %v3151_v30 = vld [vmem:[#allocation2 + $0x30] ss:$12 sps:$4 sm:$0xff]  }
  0x2f   :  { %2750 = vmatmul.mubr.msk.bf16.vlgmr.msra.gmra.mxu0 %vm122_vm0, %v78_v11  ;;  %v3156_v31 = vld [vmem:[#allocation2 + $0x1c] ss:$12 sps:$4 sm:$0xff]   ;;  %v3154_v32 = vld [vmem:[#allocation2 + $0x18] ss:$12 sps:$4 sm:$0xff]   ;;  %v3157_v34 = vld [vmem:[#allocation2] ss:$12 sps:$4 sm:$0xff]  }
  0x30   :  { %3065 = vmatmul.mubr.msk.bf16.vlgmr.msra.gmra.mxu1 %vm122_vm0, %v79_v14  ;;  %177 = vmatprep.mubr.bf16.mxu0 %v3421_v0  ;;  %v3159_v33 = vld [vmem:[#allocation2 + $0x4] ss:$12 sps:$4 sm:$0xff]   ;;  %v3162_v35 = vld [vmem:[#allocation2 + $0x16c] ss:$12 sps:$4 sm:$0xff]   ;;  %v3160_v36 = vld [vmem:[#allocation2 + $0x168] ss:$12 sps:$4 sm:$0xff]  }
  0x31   :  { %3068 = vmatprep.mubr.msk.bf16.mxu1 %vm122_vm0, %v80_v15  ;;  %939 = vmatpush1.bf16.msra.mxu0 %v3136_v20  ;;  %v3167_v37 = vld [vmem:[#allocation2 + $0x154] ss:$12 sps:$4 sm:$0xff]   ;;  %v3165_v38 = vld [vmem:[#allocation2 + $0x150] ss:$12 sps:$4 sm:$0xff]   ;;  %v3169_v42 = vld [vmem:[#allocation2 + $0x138] ss:$12 sps:$4 sm:$0xff]  }
  0x32   :  { %940 = vmatprep.subr.bf16.mxu0 %v3141_v21  ;;  %v3163_v39 = vld [vmem:[#allocation2 + $0x1b4] ss:$12 sps:$4 sm:$0x3f]   ;;  %v3171_v40 = vld [vmem:[#allocation2 + $0x13c] ss:$12 sps:$4 sm:$0xff]  }
  0x33   :  { %v3168_v41 = vld [vmem:[#allocation2 + $0x1b0] ss:$12 sps:$4 sm:$0x3f]   ;;  %2815 = vmatprep.subr.msk.bf16.mxu1 %vm928_vm1, %v3163_v39  ;;  %v3172_v46 = vld [vmem:[#allocation2 + $0x198] ss:$12 sps:$4 sm:$0xff]  }
  0x34   :  { %v930_v43 = vsel %vm928_vm1, %v3168_v41, 0  ;;  %v3174_v44 = vld [vmem:[#allocation2 + $0x19c] ss:$12 sps:$4 sm:$0xff]   ;;  %v3177_v45 = vld [vmem:[#allocation2 + $0x124] ss:$12 sps:$4 sm:$0xff]  }
  0x35   :  { %941 = vmatpush1.bf16.msra.mxu0 %v3139_v22  ;;  %1022 = vmatpush1.bf16.msra.mxu1 %v930_v43  ;;  %v3175_v47 = vld [vmem:[#allocation2 + $0x120] ss:$12 sps:$4 sm:$0xff]   ;;  %v3180_v48 = vld [vmem:[#allocation2 + $0x184] ss:$12 sps:$4 sm:$0xff]   ;;  %v3181_v51 = vld [vmem:[#allocation2 + $0x108] ss:$12 sps:$4 sm:$0xff]  }
  0x36   :  { %942 = vmatprep.subr.bf16.mxu0 %v3144_v23  ;;  %1023 = vmatprep.subr.bf16.mxu1 %v3174_v44  ;;  %v3183_v49 = vld [vmem:[#allocation2 + $0x10c] ss:$12 sps:$4 sm:$0xff]   ;;  %v3184_v52 = vld [vmem:[#allocation2 + $0x170] ss:$12 sps:$4 sm:$0xff]   ;;  %v3187_v54 = vld [vmem:[#allocation2 + $0xf4] ss:$12 sps:$4 sm:$0xff]  }
  0x37   :  { %2751 = vmatmul.mubr.msk.bf16.gmra.mxu0 %vm122_vm0, %v79_v14  ;;  %v3178_v50 = vld [vmem:[#allocation2 + $0x180] ss:$12 sps:$4 sm:$0xff]   ;;  %v3185_v53 = vld [vmem:[#allocation2 + $0xf0] ss:$12 sps:$4 sm:$0xff]   ;;  %v3190_v55 = vld [vmem:[#allocation2 + $0xd8] ss:$12 sps:$4 sm:$0xff]  }
  0x38   :  { %3069 = vmatmul.mubr.msk.bf16.gmra.mxu1 %vm122_vm0, %v81_v18  ;;  %187 = vmatprep.mubr.bf16.mxu0 %v3421_v0  ;;  %v3192_v56 = vld [vmem:[#allocation2 + $0xdc] ss:$12 sps:$4 sm:$0xff]   ;;  %v3195_v57 = vld [vmem:[#allocation2 + $0xc0] ss:$12 sps:$4 sm:$0xff]   ;;  %v3197_v58 = vld [vmem:[#allocation2 + $0xc4] ss:$12 sps:$4 sm:$0xff]  }
  0x39   :  { %1043 = vmatprep.mubr.bf16.mxu1 %v3421_v0  ;;  %943 = vmatpush1.bf16.msra.mxu0 %v3142_v24 }
  0x3a   :  { %944 = vmatprep.subr.bf16.mxu0 %v3147_v25  ;;  %1024 = vmatpush1.bf16.msra.mxu1 %v3172_v46 }
  0x3b   :  { %1025 = vmatprep.subr.bf16.mxu1 %v3180_v48 }
  0x3d   :  { %945 = vmatpush1.bf16.msra.mxu0 %v3145_v26 }
  0x3e   :  { %946 = vmatprep.subr.bf16.mxu0 %v3150_v27  ;;  %1026 = vmatpush1.bf16.msra.mxu1 %v3178_v50 }
  0x3f   :  { %2752 = vmatmul.mubr.msk.bf16.gmra.mxu0 %vm122_vm0, %v80_v15  ;;  %2919 = vmatprep.subr.bf16.mxu1 %v3184_v52 }
  0x40   :  { %197 = vmatprep.mubr.bf16.mxu0 %v3421_v0 }
  0x41   :  { %947 = vmatpush1.bf16.msra.mxu0 %v3148_v28 }
  0x42   :  { %948 = vmatprep.subr.bf16.mxu0 %v3153_v29 }
  0x45   :  { %949 = vmatpush1.bf16.msra.mxu0 %v3151_v30 }
  0x46   :  { %950 = vmatprep.subr.bf16.mxu0 %v3156_v31 }
  0x47   :  { %2753 = vmatmul.mubr.msk.bf16.gmra.mxu0 %vm122_vm0, %v81_v18 }
  0x49   :  { %951 = vmatpush1.bf16.msra.mxu0 %v3154_v32 }
  0x4a   :  { %952 = vmatprep.subr.bf16.mxu0 %v3159_v33 }
  0x4d   :  { %953 = vmatpush1.bf16.msra.mxu0 %v3157_v34 }
  0x4e   :  { %954 = vmatprep.subr.bf16.mxu0 %v3162_v35 }
  0x51   :  { %955 = vmatpush2.bf16.msra.mxu0 %v3160_v36 }
  0x52   :  { %956 = vmatprep.subr.bf16.mxu0 %v3167_v37 }
  0x55   :  { %957 = vmatpush2.bf16.msra.mxu0 %v3165_v38 }
  0x56   :  { %958 = vmatprep.subr.bf16.mxu0 %v3171_v40 }
  0x59   :  { %959 = vmatpush2.bf16.msra.mxu0 %v3169_v42 }
  0x5a   :  { %960 = vmatprep.subr.bf16.mxu0 %v3177_v45 }
  0x5d   :  { %961 = vmatpush2.bf16.msra.mxu0 %v3175_v47 }
  0x5e   :  { %962 = vmatprep.subr.bf16.mxu0 %v3183_v49 }
  0x61   :  { %963 = vmatpush2.bf16.msra.mxu0 %v3181_v51 }
  0x62   :  { %964 = vmatprep.subr.bf16.mxu0 %v3187_v54 }
  0x65   :  { %965 = vmatpush2.bf16.msra.mxu0 %v3185_v53 }
  0x66   :  { %966 = vmatprep.subr.bf16.mxu0 %v3192_v56 }
  0x69   :  { %967 = vmatpush2.bf16.msra.mxu0 %v3190_v55 }
  0x6a   :  { %968 = vmatprep.subr.bf16.mxu0 %v3197_v58 }
  0x6d   :  { %969 = vmatpush2.bf16.msra.mxu0 %v3195_v57 }
  0xef   :  { %v3526_v59 = vpop.f32.mrf.mxu0 }
  0xf0   :  { %v3528_v60 = vpop.f32.mrf.mxu1  ;;  %v324_v2 = vmul.f32 %v3526_v59, %v3526_v59 }
  0xf1   :  { %v3530_v61 = vpop.f32.mrf.mxu0  ;;  %v332_v3 = vmul.f32 %v3528_v60, %v3528_v60  ;;  %v303_v12 = vsel %vm299_vm2, %v3528_v60, 0.0 }
  0xf2   :  { %v3532_v62 = vpop.f32.mrf.mxu1  ;;  %v325_v6 = vmul.f32 %v3530_v61, %v3530_v61 }
  0xf3   :  { %v3534_v63 = vpop.f32.mrf.mxu0  ;;  %v326_v7 = vmul.f32 %v3532_v62, %v3532_v62  ;;  %v300_v16 = vsel %vm299_vm2, %v3532_v62, 0.0  ;;  %v377_v22 = vsel %vm299_vm2, %v332_v3, 0.0 }
  0xf4   :  { %v3536_v1 = vpop.f32.mrf.mxu1  ;;  %v327_v4 = vmul.f32 %v3534_v63, %v3534_v63  ;;  %v428_v5 = vpack.c.bf16 %v3534_v63, %v3526_v59  ;;  %v273_v8 = vadd.f32 %v3534_v63, %v3526_v59 }
  0xf5   :  { %v433_v9 = vpack.c.bf16 %v3536_v1, %v3528_v60  ;;  %v3554_v10 = vpop.f32.mrf.mxu0  ;;  %v335_v13 = vmul.f32 %v3536_v1, %v3536_v1  ;;  %v374_v26 = vsel %vm299_vm2, %v326_v7, 0.0  ;;  %v305_v32 = vsel %vm299_vm2, %v3536_v1, 0.0  ;;  %v3193_v1 = vld [vmem:[#allocation2 + $0x98] ss:$12 sps:$4 sm:$0xff]  }
  0xf6   :  { %v3556_v11 = vpop.f32.mrf.mxu1  ;;  %v328_v14 = vmul.f32 %v3554_v10, %v3554_v10  ;;  %v429_v15 = vpack.c.bf16 %v3554_v10, %v3530_v61  ;;  %v286_v17 = vadd.f32 %v3554_v10, %v3530_v61  ;;  %v348_v23 = vadd.f32 %v327_v4, %v324_v2 }
  0xf7   :  { %v301_v18 = vsel %vm299_vm2, %v3556_v11, 0.0  ;;  %v329_v19 = vmul.f32 %v3556_v11, %v3556_v11  ;;  %v3574_v20 = vpop.f32.mrf.mxu0  ;;  %v379_v33 = vsel %vm299_vm2, %v335_v13, 0.0 }
  0xf8   :  { %v3576_v21 = vpop.f32.mrf.mxu1  ;;  %v302_v24 = vadd.f32 %v301_v18, %v300_v16  ;;  %v330_v25 = vmul.f32 %v3574_v20, %v3574_v20  ;;  %v361_v27 = vadd.f32 %v328_v14, %v325_v6  ;;  %v274_v29 = vadd.f32 %v273_v8, %v3574_v20 }
  0xf9   :  { %v375_v28 = vsel %vm299_vm2, %v329_v19, 0.0  ;;  %v3584_v30 = vpop.f32.mrf.mxu0  ;;  %v311_v36 = vsel %vm299_vm2, %v3576_v21, 0.0  ;;  %v344_v52 = vmul.f32 %v3576_v21, %v3576_v21 }
  0xfa   :  { %v3586_v31 = vpop.f32.mrf.mxu1  ;;  %v304_v34 = vadd.f32 %v303_v12, %v302_v24  ;;  %v376_v35 = vadd.f32 %v375_v28, %v374_v26  ;;  %v287_v37 = vadd.f32 %v286_v17, %v3584_v30  ;;  %v331_v38 = vmul.f32 %v3584_v30, %v3584_v30 }
  0xfb   :  { %v338_v39 = vmul.f32 %v3586_v31, %v3586_v31  ;;  %v3598_v40 = vpop.f32.mrf.mxu0  ;;  %v349_v43 = vadd.f32 %v348_v23, %v330_v25  ;;  %v307_v47 = vsel %vm299_vm2, %v3586_v31, 0.0  ;;  %v385_v24 = vsel %vm299_vm2, %v344_v52, 0.0 }
  0xfc   :  { %v3600_v41 = vpop.f32.mrf.mxu1  ;;  %v378_v42 = vadd.f32 %v377_v22, %v376_v35  ;;  %v306_v44 = vadd.f32 %v305_v32, %v304_v34  ;;  %v333_v45 = vmul.f32 %v3598_v40, %v3598_v40  ;;  %v362_v46 = vadd.f32 %v361_v27, %v331_v38 }
  0xfd   :  { %v275_v48 = vadd.f32 %v274_v29, %v3598_v40  ;;  %v431_v49 = vpack.c.bf16 %v3598_v40, %v3574_v20  ;;  %v3609_v50 = vpop.f32.mrf.mxu0  ;;  %v381_v55 = vsel %vm299_vm2, %v338_v39, 0.0  ;;  %v439_v56 = vpack.c.bf16 %v3600_v41, %v3576_v21  ;;  %v3201_v20 = vld [vmem:[#allocation2 + $0x110] ss:$12 sps:$4 sm:$0xff]  }
  0xfe   :  { %v3611_v51 = vpop.f32.mrf.mxu1  ;;  %v308_v53 = vadd.f32 %v307_v47, %v306_v44  ;;  %v380_v54 = vadd.f32 %v379_v33, %v378_v42  ;;  %v288_v57 = vadd.f32 %v287_v37, %v3609_v50  ;;  %v334_v58 = vmul.f32 %v3609_v50, %v3609_v50 }
  0xff   :  { %v432_v2 = vpack.c.bf16 %v3609_v50, %v3584_v30  ;;  %v3623_v3 = vpop.f32.mrf.mxu0  ;;  %v350_v6 = vadd.f32 %v349_v43, %v333_v45  ;;  %v309_v7 = vsel %vm299_vm2, %v3611_v51, 0.0  ;;  %v341_v8 = vmul.f32 %v3611_v51, %v3611_v51  ;;  %v3199_v50 = vld [vmem:[#allocation2 + $0x128] ss:$12 sps:$4 sm:$0xff]  }
 0x100   :  { %v382_v4 = vadd.f32 %v381_v55, %v380_v54  ;;  %v347_v12 = vmul.f32 %v3600_v41, %v3600_v41  ;;  %v363_v13 = vadd.f32 %v362_v46, %v334_v58  ;;  %v310_v14 = vadd.f32 %v309_v7, %v308_v53 }
 0x101   :  { %v276_v16 = vadd.f32 %v275_v48, %v3623_v3  ;;  %v3632_v17 = vpop.f32.mrf.mxu0  ;;  %v383_v18 = vsel %vm299_vm2, %v341_v8, 0.0  ;;  %v336_v19 = vmul.f32 %v3623_v3, %v3623_v3  ;;  %v313_v25 = vsel %vm299_vm2, %v3600_v41, 0.0 }
 0x102   :  { %v289_v22 = vadd.f32 %v288_v57, %v3632_v17  ;;  %v337_v23 = vmul.f32 %v3632_v17, %v3632_v17  ;;  %v312_v26 = vadd.f32 %v311_v36, %v310_v14  ;;  %v384_v27 = vadd.f32 %v383_v18, %v382_v4 }
 0x103   :  { %v3643_v28 = vpop.f32.mrf.mxu0  ;;  %v351_v29 = vadd.f32 %v350_v6, %v336_v19  ;;  %v387_v35 = vsel %vm299_vm2, %v347_v12, 0.0  ;;  %v436_v63 = vpack.c.bf16 %v3611_v51, %v3586_v31 }
 0x104   :  { %v364_v32 = vadd.f32 %v363_v13, %v337_v23  ;;  %v277_v33 = vadd.f32 %v276_v16, %v3643_v28  ;;  %v339_v34 = vmul.f32 %v3643_v28, %v3643_v28  ;;  %v314_v37 = vadd.f32 %v313_v25, %v312_v26 }
 0x105   :  { %v386_v38 = vadd.f32 %v385_v24, %v384_v27  ;;  %v434_v39 = vpack.c.bf16 %v3643_v28, %v3623_v3  ;;  %v3651_v42 = vpop.f32.mrf.mxu0  ;;  %v3206_v28 = vld [vmem:[#allocation2 + $0x20] ss:$12 sps:$4 sm:$0xff]  }
 0x106   :  { %v352_v36 = vadd.f32 %v351_v29, %v339_v34  ;;  %v290_v43 = vadd.f32 %v289_v22, %v3651_v42  ;;  %v340_v44 = vmul.f32 %v3651_v42, %v3651_v42  ;;  %v435_v45 = vpack.c.bf16 %v3651_v42, %v3632_v17 }
 0x107   :  { %v315_v46 = vrot.slane %v314_v37, 4  ;;  %v388_v47 = vadd.f32 %v387_v35, %v386_v38  ;;  %v3658_v48 = vpop.f32.mrf.mxu0 }
 0x108   :  { %v365_v52 = vadd.f32 %v364_v32, %v340_v44  ;;  %v278_v53 = vadd.f32 %v277_v33, %v3658_v48  ;;  %v342_v54 = vmul.f32 %v3658_v48, %v3658_v48 }
 0x109   :  { %v316_v55 = vadd.f32 %v315_v46, %v314_v37  ;;  %v389_v57 = vrot.slane %v388_v47, 4  ;;  %v3663_v58 = vpop.f32.mrf.mxu0 }
 0x10a   :  { %v353_v4 = vadd.f32 %v352_v36, %v342_v54  ;;  %v291_v6 = vadd.f32 %v290_v43, %v3663_v58  ;;  %v343_v7 = vmul.f32 %v3663_v58, %v3663_v58 }
 0x10b   :  { %v317_v8 = vrot.slane %v316_v55, 2  ;;  %v390_v12 = vadd.f32 %v389_v57, %v388_v47  ;;  %v3668_v13 = vpop.f32.mrf.mxu0 }
 0x10c   :  { %v366_v14 = vadd.f32 %v365_v52, %v343_v7  ;;  %v279_v16 = vadd.f32 %v278_v53, %v3668_v13  ;;  %v345_v18 = vmul.f32 %v3668_v13, %v3668_v13  ;;  %v437_v19 = vpack.c.bf16 %v3668_v13, %v3658_v48  ;;  %v3210_v13 = vld [vmem:[#allocation2 + $0x1a0] ss:$12 sps:$4 sm:$0xff]  }
 0x10d   :  { %v318_v22 = vadd.f32 %v317_v8, %v316_v55  ;;  %v391_v23 = vrot.slane %v390_v12, 2  ;;  %v3675_v24 = vpop.f32.mrf.mxu0 }
 0x10e   :  { %v280_v25 = vrot.slane %v279_v16, 4  ;;  %v354_v26 = vadd.f32 %v353_v4, %v345_v18  ;;  %v292_v27 = vadd.f32 %v291_v6, %v3675_v24  ;;  %v346_v29 = vmul.f32 %v3675_v24, %v3675_v24 }
 0x10f   :  { %v319_v32 = vrot.slane %v318_v22, 1  ;;  %v392_v33 = vadd.f32 %v391_v23, %v390_v12  ;;  %v438_v42 = vpack.c.bf16 %v3675_v24, %v3663_v58  ;;  %v3204_v58 = vld [vmem:[#allocation2 + $0x38] ss:$12 sps:$4 sm:$0xff]  }
 0x110   :  { %v281_v34 = vadd.f32 %v280_v25, %v279_v16  ;;  %v355_v35 = vrot.slane %v354_v26, 4  ;;  %v293_v37 = vrot.slane %v292_v27, 4  ;;  %v367_v38 = vadd.f32 %v366_v14, %v346_v29 }
 0x111   :  { %v320_v36 = vadd.f32 %v319_v32, %v318_v22  ;;  %v393_v43 = vrot.slane %v392_v33, 1 }
 0x112   :  { %v282_v44 = vrot.slane %v281_v34, 2  ;;  %v356_v46 = vadd.f32 %v355_v35, %v354_v26  ;;  %v294_v47 = vadd.f32 %v293_v37, %v292_v27  ;;  %v368_v52 = vrot.slane %v367_v38, 4 }
 0x113   :  { %v323_v53 = vmul.f32 0.015625, %v320_v36  ;;  %v394_v54 = vadd.f32 %v393_v43, %v392_v33 }
 0x114   :  { %v283_v55 = vadd.f32 %v282_v44, %v281_v34  ;;  %v357_v57 = vrot.slane %v356_v46, 2  ;;  %v295_v4 = vrot.slane %v294_v47, 2  ;;  %v369_v6 = vadd.f32 %v368_v52, %v367_v38 }
 0x115   :  { %v397_v7 = vmul.f32 0.015625, %v394_v54  ;;  %v400_v8 = vmul.f32 %v323_v53, %v323_v53 }
 0x116   :  { %v284_v18 = vrot.slane %v283_v55, 1  ;;  %v358_v12 = vadd.f32 %v357_v57, %v356_v46  ;;  %v296_v16 = vadd.f32 %v295_v4, %v294_v47  ;;  %v370_v23 = vrot.slane %v369_v6, 2  ;;  %v69_v57 = vld [vmem:[%s4279_s5 + $0x10] sm:$0xff] }
 0x117   :  { %v403_v25 = vsub.f32 %v397_v7, %v400_v8  ;;  %v446_v4 = vlaneseq }
 0x118   :  { %v285_v14 = vadd.f32 %v284_v18, %v283_v55  ;;  %v359_v22 = vrot.slane %v358_v12, 1  ;;  %v297_v29 = vrot.slane %v296_v16, 1  ;;  %v371_v32 = vadd.f32 %v370_v23, %v369_v6  ;;  %v3688_v23 = vld [vmem:[%s4279_s5] sm:$0xff] }
 0x119   :  { %v406_v26 = vadd.f32 1e-05, %v403_v25 }
 0x11a   :  { %v321_v27 = vmul.f32 0.015625, %v285_v14  ;;  %v360_v35 = vadd.f32 %v359_v22, %v358_v12  ;;  %v298_v37 = vadd.f32 %v297_v29, %v296_v16  ;;  %v372_v33 = vrot.slane %v371_v32, 1 }
 0x11b   :  { %3307 = vrsqrt.f32 %v406_v26  ;;  %v3683_v12 = vshrl.u32 %v446_v4, 7 }
 0x11c   :  { %v395_v34 = vmul.f32 0.015625, %v360_v35  ;;  %v398_v36 = vmul.f32 %v321_v27, %v321_v27  ;;  %v322_v38 = vmul.f32 0.015625, %v298_v37  ;;  %v373_v43 = vadd.f32 %v372_v33, %v371_v32  ;;  %v3694_v32 = vld [vmem:[%s4279_s5 + $0x8] sm:$0xff] }
 0x11d   :  { %v448_v22 = vsub.s32 0, %v3683_v12 }
 0x11e   :  { %v401_v44 = vsub.f32 %v395_v34, %v398_v36  ;;  %v396_v52 = vmul.f32 0.015625, %v373_v43  ;;  %v399_v46 = vmul.f32 %v322_v38, %v322_v38 }
 0x120   :  { %v404_v47 = vadd.f32 1e-05, %v401_v44  ;;  %v402_v54 = vsub.f32 %v396_v52, %v399_v46 }
 0x122   :  { %3309 = vrsqrt.f32 %v404_v47  ;;  %v405_v55 = vadd.f32 1e-05, %v402_v54  ;;  %v430_v47 = vpack.c.bf16 %v3556_v11, %v3532_v62 }
 0x124   :  { %3311 = vrsqrt.f32 %v405_v55 }
 0x128   :  { %v3308_v6 = vpop.eup %3307 }
 0x129   :  { %v412_v7 = vmul.f32 %v3308_v6, %v69_v57 }
 0x12b   :  { %v415_v8 = vmul.f32 %v412_v7, %v323_v53  ;;  %v442_v18 = vpack.c.bf16 %v412_v7, %v412_v7 }
 0x12d   :  { %v421_v16 = vrot.slane %v415_v8, 7  ;;  %v458_v29 = vpack.i.b16 %v442_v18, %v442_v18 }
 0x12f   :  { %v3310_v25 = vpop.eup %3309  ;;  %v427_v14 = vsub.f32 %v69_v57, %v421_v16  ;;  %v3698_v36 = vrot.slane %v458_v29, %v448_v22 }
 0x130   :  { %v410_v53 = vmul.f32 %v3310_v25, %v3688_v23 }
 0x131   :  { %v3312_v26 = vpop.eup %3311  ;;  %v478_v35 = vpack.c.bf16 %v427_v14, %v427_v14  ;;  %v466_v7 = vmul.bf16 %v3698_v36, %v430_v47  ;;  %v469_v29 = vmul.bf16 %v3698_v36, %v433_v9  ;;  %v472_v47 = vmul.bf16 %v3698_v36, %v436_v63  ;;  %v3215_v63 = vld [vmem:[#allocation5 + $0x90] ss:$12 sps:$4 sm:$0xff]  }
 0x132   :  { %v413_v37 = vmul.f32 %v410_v53, %v321_v27  ;;  %v440_v33 = vpack.c.bf16 %v410_v53, %v410_v53  ;;  %v411_v34 = vmul.f32 %v3312_v26, %v3694_v32  ;;  %v475_v17 = vmul.bf16 %v3698_v36, %v439_v56 }
 0x133   :  { %v496_v43 = vshrl.u32 %v478_v35, 16  ;;  %v3188_v35 = vld [vmem:[#allocation2 + $0xb0] ss:$12 sps:$4 sm:$0xff]  }
 0x134   :  { %v419_v44 = vrot.slane %v413_v37, 7  ;;  %v414_v52 = vmul.f32 %v411_v34, %v322_v38  ;;  %v441_v46 = vpack.c.bf16 %v411_v34, %v411_v34  ;;  %v444_v57 = vpack.i.b16 %v440_v33, %v440_v33  ;;  %v3189_v33 = vld [vmem:[#allocation2 + $0x158] ss:$12 sps:$4 sm:$0xff]  }
 0x135   :  { %v497_v54 = vpack.i.b16 %v496_v43, %v496_v43 }
 0x136   :  { %v425_v55 = vsub.f32 %v3688_v23, %v419_v44  ;;  %v420_v4 = vrot.slane %v414_v52, 7  ;;  %v451_v27 = vpack.i.b16 %v441_v46, %v441_v46  ;;  %v3708_v38 = vrot.slane %v444_v57, %v448_v22 }
 0x137   :  { %v3703_v6 = vrot.slane %v497_v54, %v448_v22 }
 0x138   :  { %v476_v8 = vpack.c.bf16 %v425_v55, %v425_v55  ;;  %v426_v18 = vsub.f32 %v3694_v32, %v420_v4  ;;  %v3710_v62 = vrot.slane %v451_v27, %v448_v22  ;;  %v464_v52 = vmul.bf16 %v3708_v38, %v428_v5  ;;  %v3194_v5 = vld [vmem:[#allocation2 + $0x140] ss:$12 sps:$4 sm:$0xff]  }
 0x139   :  { %v505_v16 = vadd.bf16 %v3703_v6, %v466_v7  ;;  %v508_v34 = vadd.bf16 %v3703_v6, %v469_v29  ;;  %v511_v4 = vadd.bf16 %v3703_v6, %v472_v47  ;;  %v467_v31 = vmul.bf16 %v3708_v38, %v431_v49  ;;  %v3224_v47 = vld [vmem:[#allocation5 + $0x48] ss:$12 sps:$4 sm:$0xff]  }
 0x13a   :  { %v480_v25 = vshrl.u32 %v476_v8, 16  ;;  %v477_v14 = vpack.c.bf16 %v426_v18, %v426_v18  ;;  %v465_v60 = vmul.bf16 %v3710_v62, %v429_v15  ;;  %v468_v59 = vmul.bf16 %v3710_v62, %v432_v2  ;;  %v3200_v8 = vld [vmem:[#allocation2 + $0x68] ss:$12 sps:$4 sm:$0xff]  }
 0x13b   :  { %v517_v11 = vmul.bf16 1045249613, %v505_v16  ;;  %v520_v61 = vmul.bf16 1045249613, %v508_v34  ;;  %v471_v2 = vmul.bf16 %v3710_v62, %v435_v45  ;;  %v523_v40 = vmul.bf16 1045249613, %v511_v4 }
 0x13c   :  { %v481_v53 = vpack.i.b16 %v480_v25, %v480_v25  ;;  %v488_v26 = vshrl.u32 %v477_v14, 16  ;;  %v3202_v45 = vld [vmem:[#allocation2 + $0x50] ss:$12 sps:$4 sm:$0xff]   ;;  %v514_v29 = vadd.bf16 %v3703_v6, %v475_v17  ;;  %v474_v21 = vmul.bf16 %v3710_v62, %v438_v42  ;;  %v3205_v6 = vld [vmem:[#allocation2 + $0xe0] ss:$12 sps:$4 sm:$0xff]  }
 0x13d   :  { %v3716_v37 = vmax.bf16 %v517_v11, %v505_v16  ;;  %v3741_v30 = vmax.bf16 %v520_v61, %v508_v34  ;;  %v535_v14 = vmax.bf16 %v523_v40, %v511_v4  ;;  %v3203_v11 = vld [vmem:[#allocation2 + $0xf8] ss:$12 sps:$4 sm:$0xff]   ;;  %v473_v62 = vmul.bf16 %v3708_v38, %v437_v19  ;;  %v3218_v61 = vld [vmem:[#allocation5 + $0x78] ss:$12 sps:$4 sm:$0xff]   ;;  %v3253_v40 = vld [vmem:[#allocation5 + $0xf4] ss:$12 sps:$4 sm:$0xff]  }
 0x13e   :  { %v3719_v43 = vrot.slane %v481_v53, %v448_v22  ;;  %v489_v44 = vpack.i.b16 %v488_v26, %v488_v26  ;;  %v470_v53 = vmul.bf16 %v3708_v38, %v434_v39  ;;  %v526_v26 = vmul.bf16 1045249613, %v514_v29  ;;  %v3211_v38 = vld [vmem:[#allocation2 + $0x188] ss:$12 sps:$4 sm:$0xff]   ;;  %v3235_v4 = vld [vmem:[#allocation5 + $0x4] ss:$12 sps:$4 sm:$0xff]  }
 0x13f   :  { %2816 = vmatmul.mubr.msk.bf16.vlgmr.msra.gmra.mxu1 %vm299_vm2, %v3716_v37  ;;  %v3256_v17 = vld [vmem:[#allocation5 + $0xdc] ss:$12 sps:$4 sm:$0xff]   ;;  %v3254_v42 = vld [vmem:[#allocation5 + $0xd8] ss:$12 sps:$4 sm:$0xff]  }
 0x140   :  { %2920 = vmatpush3.bf16.msra.mxu1 %v3188_v35  ;;  %1053 = vmatprep.mubr.bf16.mxu1 %v3421_v0  ;;  %v494_v9 = vrot.slane %v489_v44, %v448_v22  ;;  %v503_v46 = vadd.bf16 %v3719_v43, %v464_v52  ;;  %v3198_v22 = vld [vmem:[#allocation2 + $0x80] ss:$12 sps:$4 sm:$0xff]   ;;  %v506_v7 = vadd.bf16 %v3719_v43, %v467_v31  ;;  %v3208_v52 = vld [vmem:[#allocation2 + $0x8] ss:$12 sps:$4 sm:$0xff]   ;;  %v3236_v31 = vld [vmem:[#allocation5 + $0x168] ss:$12 sps:$4 sm:$0xff]  }
 0x141   :  { %2921 = vmatprep.subr.bf16.mxu1 %v3189_v33  ;;  %v509_v56 = vadd.bf16 %v3719_v43, %v470_v53  ;;  %v538_v35 = vmax.bf16 %v526_v26, %v514_v29  ;;  %v3207_v33 = vld [vmem:[#allocation2 + $0xc8] ss:$12 sps:$4 sm:$0xff]   ;;  %v512_v44 = vadd.bf16 %v3719_v43, %v473_v62  ;;  %v3265_v26 = vld [vmem:[#allocation5 + $0x19c] ss:$12 sps:$4 sm:$0xff]  }
 0x142   :  { %v504_v10 = vadd.bf16 %v494_v9, %v465_v60  ;;  %v507_v15 = vadd.bf16 %v494_v9, %v468_v59  ;;  %v515_v54 = vmul.bf16 1045249613, %v503_v46  ;;  %v510_v16 = vadd.bf16 %v494_v9, %v471_v2  ;;  %v3214_v43 = vld [vmem:[#allocation5 + $0xac] ss:$12 sps:$4 sm:$0xff]   ;;  %v3217_v59 = vld [vmem:[#allocation5 + $0x94] ss:$12 sps:$4 sm:$0xff]  }
 0x143   :  { %v518_v49 = vmul.bf16 1045249613, %v506_v7  ;;  %v513_v36 = vadd.bf16 %v494_v9, %v474_v21  ;;  %v521_v3 = vmul.bf16 1045249613, %v509_v56  ;;  %v524_v9 = vmul.bf16 1045249613, %v512_v44  ;;  %1877 = vmatprep.subr.bf16.mxu0 %v3214_v43 }
 0x144   :  { %2922 = vmatpush3.bf16.msra.mxu1 %v3193_v1  ;;  %v516_v55 = vmul.bf16 1045249613, %v504_v10  ;;  %v519_v57 = vmul.bf16 1045249613, %v507_v15  ;;  %v527_v27 = vmax.bf16 %v515_v54, %v503_v46  ;;  %v522_v25 = vmul.bf16 1045249613, %v510_v16 }
 0x145   :  { %2923 = vmatprep.subr.bf16.mxu1 %v3194_v5  ;;  %v530_v41 = vmax.bf16 %v518_v49, %v506_v7  ;;  %v525_v39 = vmul.bf16 1045249613, %v513_v36  ;;  %v533_v34 = vmax.bf16 %v521_v3, %v509_v56  ;;  %v3209_v1 = vld [vmem:[#allocation2 + $0x1b8] ss:$12 sps:$4 sm:$0x3f]   ;;  %v536_v19 = vmax.bf16 %v524_v9, %v512_v44 }
 0x146   :  { %v528_v51 = vmax.bf16 %v516_v55, %v504_v10  ;;  %v531_v18 = vmax.bf16 %v519_v57, %v507_v15  ;;  %v534_v24 = vmax.bf16 %v522_v25, %v510_v16  ;;  %v936_v48 = vsel %vm928_vm1, %v3209_v1, 0  ;;  %v3212_v46 = vld [vmem:[#allocation5 + $0xa8] ss:$12 sps:$4 sm:$0xff]   ;;  %v3221_v10 = vld [vmem:[#allocation5 + $0x60] ss:$12 sps:$4 sm:$0xff]  }
 0x147   :  { %2817 = vmatmul.mubr.msk.bf16.gmra.mxu1 %vm299_vm2, %v3741_v30  ;;  %v537_v60 = vmax.bf16 %v525_v39, %v513_v36  ;;  %v3220_v5 = vld [vmem:[#allocation5 + $0x7c] ss:$12 sps:$4 sm:$0xff]   ;;  %v3226_v15 = vld [vmem:[#allocation5 + $0x4c] ss:$12 sps:$4 sm:$0xff]   ;;  %v3229_v54 = vld [vmem:[#allocation5 + $0x34] ss:$12 sps:$4 sm:$0xff]  }
 0x148   :  { %2924 = vmatpush3.bf16.msra.mxu1 %v3198_v22  ;;  %970 = vmatprep.mubr.bf16.mxu0 %v528_v51  ;;  %v3227_v22 = vld [vmem:[#allocation5 + $0x30] ss:$12 sps:$4 sm:$0xff]   ;;  %v3230_v57 = vld [vmem:[#allocation5 + $0x18] ss:$12 sps:$4 sm:$0xff]   ;;  %v3257_v25 = vld [vmem:[#allocation5 + $0xc0] ss:$12 sps:$4 sm:$0xff]  }
 0x149   :  { %2925 = vmatprep.subr.bf16.mxu1 %v3199_v50  ;;  %971 = vmatmul.mubr.bf16.vlgmr.msra.gmra.mxu0 %v527_v27  ;;  %v3232_v55 = vld [vmem:[#allocation5 + $0x1c] ss:$12 sps:$4 sm:$0xff]   ;;  %v3238_v50 = vld [vmem:[#allocation5 + $0x16c] ss:$12 sps:$4 sm:$0xff]  }
 0x14a   :  { %980 = vmatprep.mubr.bf16.mxu0 %v531_v18  ;;  %1063 = vmatprep.mubr.bf16.mxu1 %v3421_v0  ;;  %v3239_v2 = vld [vmem:[#allocation5 + $0x150] ss:$12 sps:$4 sm:$0xff]   ;;  %v3242_v7 = vld [vmem:[#allocation5 + $0x138] ss:$12 sps:$4 sm:$0xff]  }
 0x14b   :  { %1878 = vmatpush1.bf16.msra.mxu0 %v3212_v46  ;;  %v3250_v16 = vld [vmem:[#allocation5 + $0x10c] ss:$12 sps:$4 sm:$0xff]   ;;  %v3251_v49 = vld [vmem:[#allocation5 + $0xf0] ss:$12 sps:$4 sm:$0xff]  }
 0x14c   :  { %2926 = vmatpush3.bf16.msra.mxu1 %v3200_v8  ;;  %1879 = vmatprep.subr.bf16.mxu0 %v3217_v59  ;;  %v3247_v8 = vld [vmem:[#allocation5 + $0x124] ss:$12 sps:$4 sm:$0xff]   ;;  %v3260_v21 = vld [vmem:[#allocation5 + $0x1b4] ss:$12 sps:$4 sm:$0x3f]  }
 0x14d   :  { %2927 = vmatprep.subr.bf16.mxu1 %v3201_v20  ;;  %v3248_v20 = vld [vmem:[#allocation5 + $0x108] ss:$12 sps:$4 sm:$0xff]   ;;  %v3263_v39 = vld [vmem:[#allocation5 + $0x198] ss:$12 sps:$4 sm:$0xff]   ;;  %v3272_v44 = vld [vmem:[#allocation5 + $0x170] ss:$12 sps:$4 sm:$0xff]  }
 0x14f   :  { %2818 = vmatmul.mubr.msk.bf16.gmra.mxu1 %vm299_vm2, %v535_v14  ;;  %1880 = vmatpush1.bf16.msra.mxu0 %v3215_v63 }
 0x150   :  { %2928 = vmatpush3.bf16.msra.mxu1 %v3202_v45  ;;  %1073 = vmatprep.mubr.bf16.mxu1 %v3421_v0  ;;  %v3259_v45 = vld [vmem:[#allocation5 + $0xc4] ss:$12 sps:$4 sm:$0xff]  }
 0x151   :  { %2929 = vmatprep.subr.bf16.mxu1 %v3203_v11  ;;  %981 = vmatmul.mubr.bf16.gmra.mxu0 %v530_v41 }
 0x152   :  { %990 = vmatprep.mubr.bf16.mxu0 %v534_v24  ;;  %1881 = vmatprep.subr.bf16.mxu0 %v3220_v5 }
 0x153   :  { %1882 = vmatpush1.bf16.msra.mxu0 %v3218_v61 }
 0x154   :  { %2930 = vmatpush3.bf16.msra.mxu1 %v3204_v58  ;;  %v3786_v58 = vld [vmem:[#allocation5 + $0x1b8] ss:$12 sps:$4 sm:$0x3f]  }
 0x155   :  { %2931 = vmatprep.subr.bf16.mxu1 %v3205_v6 }
 0x157   :  { %2819 = vmatmul.mubr.msk.bf16.gmra.mxu1 %vm299_vm2, %v538_v35 }
 0x158   :  { %2932 = vmatpush3.bf16.msra.mxu1 %v3206_v28  ;;  %1116 = vmatprep.mubr.bf16.mxu1 %v528_v51  ;;  %v3241_v51 = vld [vmem:[#allocation5 + $0x154] ss:$12 sps:$4 sm:$0xff]  }
 0x159   :  { %2933 = vmatprep.subr.bf16.mxu1 %v3207_v33  ;;  %991 = vmatmul.mubr.bf16.gmra.mxu0 %v533_v34  ;;  %v3268_v33 = vld [vmem:[#allocation5 + $0x180] ss:$12 sps:$4 sm:$0xff]  }
 0x15a   :  { %1000 = vmatprep.mubr.bf16.mxu0 %v537_v60 }
 0x15c   :  { %2934 = vmatpush3.bf16.msra.mxu1 %v3208_v52 }
 0x15d   :  { %3114 = vmatprep.subr.msk.bf16.mxu1 %vm928_vm1, %v3209_v1 }
 0x15f   :  { %1117 = vmatmul.mubr.bf16.vlgmr.msra.gmra.mxu1 %v527_v27  ;;  %v3244_v27 = vld [vmem:[#allocation5 + $0x13c] ss:$12 sps:$4 sm:$0xff]  }
 0x160   :  { %3073 = vmatpush3.bf16.msra.mxu1 %v936_v48  ;;  %1124 = vmatprep.mubr.bf16.mxu1 %v531_v18  ;;  %v3245_v18 = vld [vmem:[#allocation5 + $0x120] ss:$12 sps:$4 sm:$0xff]  }
 0x161   :  { %1001 = vmatmul.mubr.bf16.gmra.mxu0 %v536_v19  ;;  %3074 = vmatprep.subr.bf16.mxu1 %v3210_v13 }
 0x164   :  { %3075 = vmatpush3.bf16.msra.mxu1 %v3210_v13 }
 0x165   :  { %3076 = vmatprep.subr.bf16.mxu1 %v3211_v38 }
 0x167   :  { %1125 = vmatmul.mubr.bf16.gmra.mxu1 %v530_v41  ;;  %v3262_v41 = vld [vmem:[#allocation5 + $0x1b0] ss:$12 sps:$4 sm:$0x3f]  }
 0x168   :  { %1132 = vmatprep.mubr.bf16.mxu1 %v534_v24  ;;  %3077 = vmatpush3.bf16.msra.mxu1 %v3211_v38  ;;  %v1869_v24 = vsel %vm928_vm1, %v3262_v41, 0 }
 0x169   :  { %2881 = vmatprep.subr.msk.bf16.mxu1 %vm928_vm1, %v3260_v21 }
 0x16f   :  { %1133 = vmatmul.mubr.bf16.gmra.mxu1 %v533_v34  ;;  %v3270_v34 = vld [vmem:[#allocation5 + $0x184] ss:$12 sps:$4 sm:$0xff]  }
 0x170   :  { %1140 = vmatprep.mubr.bf16.mxu1 %v537_v60 }
 0x177   :  { %1141 = vmatmul.mubr.bf16.gmra.mxu1 %v536_v19 }
 0x178   :  { %3078 = vmatprep.mubr.msk.bf16.mxu1 %vm299_vm2, %v3716_v37  ;;  %v3223_v37 = vld [vmem:[#allocation5 + $0x64] ss:$12 sps:$4 sm:$0xff]  }
 0x179   :  { %1883 = vmatprep.subr.bf16.mxu0 %v3223_v37 }
 0x17a   :  { %1884 = vmatpush1.bf16.msra.mxu0 %v3221_v10 }
 0x17b   :  { %1885 = vmatprep.subr.bf16.mxu0 %v3226_v15 }
 0x17e   :  { %1886 = vmatpush1.bf16.msra.mxu0 %v3224_v47 }
 0x17f   :  { %3079 = vmatmul.mubr.msk.bf16.vlgmr.msra.gmra.mxu1 %vm299_vm2, %v3741_v30  ;;  %1887 = vmatprep.subr.bf16.mxu0 %v3229_v54  ;;  %v3233_v30 = vld [vmem:[#allocation5] ss:$12 sps:$4 sm:$0xff]  }
 0x180   :  { %3082 = vmatprep.mubr.msk.bf16.mxu1 %vm299_vm2, %v535_v14  ;;  %1961 = vmatpush1.bf16.msra.mxu1 %v1869_v24 }
 0x181   :  { %1962 = vmatprep.subr.bf16.mxu1 %v3265_v26 }
 0x182   :  { %1888 = vmatpush1.bf16.msra.mxu0 %v3227_v22 }
 0x183   :  { %1889 = vmatprep.subr.bf16.mxu0 %v3232_v55 }
 0x184   :  { %1963 = vmatpush1.bf16.msra.mxu1 %v3263_v39 }
 0x185   :  { %1964 = vmatprep.subr.bf16.mxu1 %v3270_v34 }
 0x186   :  { %1890 = vmatpush1.bf16.msra.mxu0 %v3230_v57 }
 0x187   :  { %3083 = vmatmul.mubr.msk.bf16.gmra.mxu1 %vm299_vm2, %v538_v35  ;;  %1891 = vmatprep.subr.bf16.mxu0 %v3235_v4 }
 0x188   :  { %1982 = vmatprep.mubr.bf16.mxu1 %v3421_v0  ;;  %1965 = vmatpush1.bf16.msra.mxu1 %v3268_v33 }
 0x189   :  { %2966 = vmatprep.subr.bf16.mxu1 %v3272_v44 }
 0x18a   :  { %1892 = vmatpush1.bf16.msra.mxu0 %v3233_v30 }
 0x18b   :  { %1893 = vmatprep.subr.bf16.mxu0 %v3238_v50 }
 0x18e   :  { %1894 = vmatpush2.bf16.msra.mxu0 %v3236_v31 }
 0x18f   :  { %1895 = vmatprep.subr.bf16.mxu0 %v3241_v51 }
 0x192   :  { %1896 = vmatpush2.bf16.msra.mxu0 %v3239_v2 }
 0x193   :  { %1897 = vmatprep.subr.bf16.mxu0 %v3244_v27 }
 0x196   :  { %1898 = vmatpush2.bf16.msra.mxu0 %v3242_v7 }
 0x197   :  { %1899 = vmatprep.subr.bf16.mxu0 %v3247_v8 }
 0x19a   :  { %1900 = vmatpush2.bf16.msra.mxu0 %v3245_v18 }
 0x19b   :  { %1901 = vmatprep.subr.bf16.mxu0 %v3250_v16 }
 0x19e   :  { %1902 = vmatpush2.bf16.msra.mxu0 %v3248_v20 }
 0x19f   :  { %1903 = vmatprep.subr.bf16.mxu0 %v3253_v40 }
 0x1a2   :  { %1904 = vmatpush2.bf16.msra.mxu0 %v3251_v49 }
 0x1a3   :  { %1905 = vmatprep.subr.bf16.mxu0 %v3256_v17 }
 0x1a6   :  { %1906 = vmatpush2.bf16.msra.mxu0 %v3254_v42 }
 0x1a7   :  { %1907 = vmatprep.subr.bf16.mxu0 %v3259_v45 }
 0x1aa   :  { %1908 = vmatpush2.bf16.msra.mxu0 %v3257_v25 }
 0x1ab   :  { %3115 = vmatprep.subr.msk.bf16.mxu0 %vm928_vm1, %v3786_v58 }
 0x1ff   :  { %v1045_v14 = vpop.f32.mrf.mxu1 }
 0x201   :  { %v1047_v11 = vpop.f32.mrf.mxu1 }
 0x203   :  { %v1049_v29 = vpop.f32.mrf.mxu1 }
 0x205   :  { %v1051_v53 = vpop.f32.mrf.mxu1 }
 0x207   :  { %v1055_v56 = vpop.f32.mrf.mxu1 }
 0x209   :  { %v1057_v36 = vpop.f32.mrf.mxu1  ;;  %v972_v6 = vpop.f32.mrf.mxu0 }
 0x20a   :  { %v3797_v61 = vadd.f32 %v1045_v14, %v972_v6 }
 0x20b   :  { %v1059_v3 = vpop.f32.mrf.mxu1  ;;  %v974_v28 = vpop.f32.mrf.mxu0 }
 0x20c   :  { %v3803_v15 = vadd.f32 %v1047_v11, %v974_v28  ;;  %v1264_v30 = vmul.f32 %v3797_v61, %v3797_v61 }
 0x20d   :  { %v1061_v62 = vpop.f32.mrf.mxu1  ;;  %v976_v35 = vpop.f32.mrf.mxu0 }
 0x20e   :  { %v3795_v59 = vadd.f32 %v1049_v29, %v976_v35  ;;  %v1265_v51 = vmul.f32 %v3803_v15, %v3803_v15 }
 0x20f   :  { %v1065_v52 = vpop.f32.mrf.mxu1  ;;  %v978_v60 = vpop.f32.mrf.mxu0 }
 0x210   :  { %v3799_v37 = vadd.f32 %v1051_v53, %v978_v60  ;;  %v1267_v55 = vmul.f32 %v3795_v59, %v3795_v59  ;;  %v1214_v2 = vadd.f32 %v3795_v59, %v3797_v61 }
 0x211   :  { %v1067_v1 = vpop.f32.mrf.mxu1  ;;  %v982_v9 = vpop.f32.mrf.mxu0 }
 0x212   :  { %v3791_v43 = vadd.f32 %v1055_v56, %v982_v9  ;;  %v1268_v50 = vmul.f32 %v3799_v37, %v3799_v37  ;;  %v1227_v16 = vadd.f32 %v3799_v37, %v3803_v15  ;;  %v1288_v17 = vadd.f32 %v1267_v55, %v1264_v30 }
 0x213   :  { %v1069_v48 = vpop.f32.mrf.mxu1  ;;  %v984_v13 = vpop.f32.mrf.mxu0 }
 0x214   :  { %v3805_v22 = vadd.f32 %v1057_v36, %v984_v13  ;;  %v1270_v27 = vmul.f32 %v3791_v43, %v3791_v43  ;;  %v1215_v42 = vadd.f32 %v1214_v2, %v3791_v43  ;;  %v1301_v11 = vadd.f32 %v1268_v50, %v1265_v51 }
 0x215   :  { %v1071_v19 = vpop.f32.mrf.mxu1  ;;  %v986_v38 = vpop.f32.mrf.mxu0 }
 0x216   :  { %v3793_v46 = vadd.f32 %v1059_v3, %v986_v38  ;;  %v1271_v20 = vmul.f32 %v3805_v22, %v3805_v22  ;;  %v1228_v29 = vadd.f32 %v1227_v16, %v3805_v22  ;;  %v1289_v41 = vadd.f32 %v1288_v17, %v1270_v27 }
 0x217   :  { %v1075_v63 = vpop.f32.mrf.mxu1  ;;  %v988_v5 = vpop.f32.mrf.mxu0 }
 0x218   :  { %v1371_v10 = vpack.c.bf16 %v3793_v46, %v3791_v43  ;;  %v3813_v31 = vadd.f32 %v1061_v62, %v988_v5  ;;  %v1273_v45 = vmul.f32 %v3793_v46, %v3793_v46  ;;  %v1216_v56 = vadd.f32 %v1215_v42, %v3793_v46 }
 0x219   :  { %v1077_v47 = vpop.f32.mrf.mxu1  ;;  %v992_v54 = vpop.f32.mrf.mxu0  ;;  %v1302_v3 = vadd.f32 %v1301_v11, %v1271_v20 }
 0x21a   :  { %v3821_v7 = vadd.f32 %v1065_v52, %v992_v54  ;;  %v1274_v53 = vmul.f32 %v3813_v31, %v3813_v31  ;;  %v1229_v28 = vadd.f32 %v1228_v29, %v3813_v31  ;;  %v1290_v35 = vadd.f32 %v1289_v41, %v1273_v45 }
 0x21b   :  { %v1079_v57 = vpop.f32.mrf.mxu1  ;;  %v994_v4 = vpop.f32.mrf.mxu0 }
 0x21c   :  { %v3827_v40 = vadd.f32 %v1067_v1, %v994_v4  ;;  %v1276_v24 = vmul.f32 %v3821_v7, %v3821_v7  ;;  %v1217_v33 = vadd.f32 %v1216_v56, %v3821_v7  ;;  %v1303_v60 = vadd.f32 %v1302_v3, %v1274_v53 }
 0x21d   :  { %v1081_v8 = vpop.f32.mrf.mxu1  ;;  %v996_v18 = vpop.f32.mrf.mxu0 }
 0x21e   :  { %v3829_v49 = vadd.f32 %v1069_v48, %v996_v18  ;;  %v1277_v39 = vmul.f32 %v3827_v40, %v3827_v40  ;;  %v1230_v1 = vadd.f32 %v1229_v28, %v3827_v40  ;;  %v1291_v13 = vadd.f32 %v1290_v35, %v1276_v24 }
 0x21f   :  { %v3834_v25 = vpop.f32.mrf.mxu1  ;;  %v998_v14 = vpop.f32.mrf.mxu0 }
 0x220   :  { %v1374_v21 = vpack.c.bf16 %v3829_v49, %v3821_v7  ;;  %v3844_v36 = vadd.f32 %v1071_v19, %v998_v14  ;;  %v1279_v34 = vmul.f32 %v3829_v49, %v3829_v49  ;;  %v1218_v19 = vadd.f32 %v1217_v33, %v3829_v49 }
 0x221   :  { %v3846_v6 = vpop.f32.mrf.mxu1  ;;  %v1002_v26 = vpop.f32.mrf.mxu0  ;;  %v1304_v54 = vadd.f32 %v1303_v60, %v1277_v39 }
 0x222   :  { %v3851_v62 = vadd.f32 %v1075_v63, %v1002_v26  ;;  %v1280_v9 = vmul.f32 %v3844_v36, %v3844_v36  ;;  %v1231_v55 = vadd.f32 %v1230_v1, %v3844_v36  ;;  %v1292_v30 = vadd.f32 %v1291_v13, %v1279_v34 }
 0x223   :  { %v3856_v44 = vpop.f32.mrf.mxu1  ;;  %v1004_v52 = vpop.f32.mrf.mxu0 }
 0x224   :  { %v3861_v48 = vadd.f32 %v1077_v47, %v1004_v52  ;;  %v1282_v38 = vmul.f32 %v3851_v62, %v3851_v62  ;;  %v1219_v50 = vadd.f32 %v1218_v19, %v3851_v62  ;;  %v1305_v27 = vadd.f32 %v1304_v54, %v1280_v9 }
 0x225   :  { %v3866_v63 = vpop.f32.mrf.mxu1  ;;  %v1006_v5 = vpop.f32.mrf.mxu0 }
 0x226   :  { %v1283_v4 = vmul.f32 %v3861_v48, %v3861_v48  ;;  %v3872_v47 = vadd.f32 %v1079_v57, %v1006_v5  ;;  %v1232_v18 = vadd.f32 %v1231_v55, %v3861_v48  ;;  %v1293_v20 = vadd.f32 %v1292_v30, %v1282_v38 }
 0x227   :  { %v3874_v51 = vpop.f32.mrf.mxu1  ;;  %v1008_v2 = vpop.f32.mrf.mxu0 }
 0x228   :  { %v3877_v16 = vadd.f32 %v1081_v8, %v1008_v2  ;;  %v1220_v17 = vadd.f32 %v1219_v50, %v3872_v47  ;;  %v1285_v42 = vmul.f32 %v3872_v47, %v3872_v47  ;;  %v1377_v45 = vpack.c.bf16 %v3872_v47, %v3851_v62 }
 0x229   :  { %v2942_v14 = vpop.f32.mrf.mxu1  ;;  %v1306_v57 = vadd.f32 %v1305_v27, %v1283_v4 }
 0x22a   :  { %v1233_v11 = vadd.f32 %v1232_v18, %v3877_v16  ;;  %v1286_v29 = vmul.f32 %v3877_v16, %v3877_v16  ;;  %v1378_v8 = vpack.c.bf16 %v3877_v16, %v3861_v48  ;;  %v1221_v53 = vrot.slane %v1220_v17, 4 }
 0x22b   :  { %v1294_v41 = vadd.f32 %v1293_v20, %v1285_v42  ;;  %v2944_v56 = vpop.f32.mrf.mxu1 }
 0x22c   :  { %v1234_v24 = vrot.slane %v1233_v11, 4  ;;  %v1307_v26 = vadd.f32 %v1306_v57, %v1286_v29  ;;  %v1222_v3 = vadd.f32 %v1221_v53, %v1220_v17 }
 0x22d   :  { %v1295_v28 = vrot.slane %v1294_v41, 4  ;;  %v2945_v39 = vpop.f32.mrf.mxu1 }
 0x22e   :  { %v1235_v35 = vadd.f32 %v1234_v24, %v1233_v11  ;;  %v1308_v33 = vrot.slane %v1307_v26, 4  ;;  %v1223_v34 = vrot.slane %v1222_v3, 2 }
 0x22f   :  { %v1296_v52 = vadd.f32 %v1295_v28, %v1294_v41  ;;  %v2947_v60 = vpop.f32.mrf.mxu1 }
 0x230   :  { %v1236_v1 = vrot.slane %v1235_v35, 2  ;;  %v1309_v9 = vadd.f32 %v1308_v33, %v1307_v26  ;;  %v1224_v13 = vadd.f32 %v1223_v34, %v1222_v3 }
 0x231   :  { %v1297_v19 = vrot.slane %v1296_v52, 2  ;;  %v2948_v38 = vpop.f32.mrf.mxu1 }
 0x232   :  { %v1237_v5 = vadd.f32 %v1236_v1, %v1235_v35  ;;  %v1310_v54 = vrot.slane %v1309_v9, 2  ;;  %v1225_v55 = vrot.slane %v1224_v13, 1 }
 0x233   :  { %v1298_v4 = vadd.f32 %v1297_v19, %v1296_v52  ;;  %v2950_v30 = vpop.f32.mrf.mxu1 }
 0x234   :  { %v1238_v50 = vrot.slane %v1237_v5, 1  ;;  %v1311_v2 = vadd.f32 %v1310_v54, %v1309_v9  ;;  %v1226_v27 = vadd.f32 %v1225_v55, %v1224_v13  ;;  %v2943_v55 = vadd.f32 %v2942_v14, %v3874_v51 }
 0x235   :  { %v1299_v18 = vrot.slane %v1298_v4, 1  ;;  %v2951_v20 = vpop.f32.mrf.mxu1 }
 0x236   :  { %v1239_v17 = vadd.f32 %v1238_v50, %v1237_v5  ;;  %v1312_v42 = vrot.slane %v1311_v2, 1  ;;  %v1261_v57 = vmul.f32 0.015625, %v1226_v27  ;;  %v2937_v5 = vadd.f32 %v3846_v6, %v3834_v25 }
 0x237   :  { %v1300_v11 = vadd.f32 %v1299_v18, %v1298_v4  ;;  %v2953_v29 = vpop.f32.mrf.mxu1  ;;  %v2940_v27 = vadd.f32 %v3866_v63, %v3856_v44  ;;  %v2946_v18 = vadd.f32 %v2945_v39, %v2944_v56  ;;  %v2949_v6 = vadd.f32 %v2948_v38, %v2947_v60 }
 0x238   :  { %v3889_v53 = vmul.f32 0.015625, %v1239_v17  ;;  %v1313_v41 = vadd.f32 %v1312_v42, %v1311_v2  ;;  %v1338_v26 = vmul.f32 %v1261_v57, %v1261_v57  ;;  %v2952_v39 = vadd.f32 %v2951_v20, %v2950_v30 }
 0x239   :  { %v1335_v24 = vmul.f32 0.015625, %v1300_v11  ;;  %v2954_v3 = vpop.f32.mrf.mxu1 }
 0x23a   :  { %v1336_v28 = vmul.f32 0.015625, %v1313_v41  ;;  %v1339_v35 = vmul.f32 %v3889_v53, %v3889_v53 }
 0x23b   :  { %v1341_v33 = vsub.f32 %v1335_v24, %v1338_v26  ;;  %v2956_v34 = vpop.f32.mrf.mxu1  ;;  %v2955_v24 = vadd.f32 %v2954_v3, %v2953_v29 }
 0x23c   :  { %v1342_v52 = vsub.f32 %v1336_v28, %v1339_v35 }
 0x23d   :  { %v1344_v1 = vadd.f32 1e-05, %v1341_v33  ;;  %v2957_v9 = vpop.f32.mrf.mxu1 }
 0x23e   :  { %v1345_v13 = vadd.f32 1e-05, %v1342_v52 }
 0x23f   :  { %3313 = vrsqrt.f32 %v1344_v1  ;;  %v3080_v19 = vpop.f32.mrf.mxu1 }
 0x240   :  { %3315 = vrsqrt.f32 %v1345_v13  ;;  %v3898_v2 = vadd.f32 %v3080_v19, %v2943_v55  ;;  %v2958_v13 = vadd.f32 %v2957_v9, %v2956_v34 }
 0x241   :  { %v1183_v54 = vpop.f32.mrf.mxu1 }
 0x242   :  { %v3896_v4 = vadd.f32 %v2937_v5, %v1183_v54  ;;  %v1272_v51 = vmul.f32 %v3898_v2, %v3898_v2  ;;  %v1243_v60 = vsel %vm299_vm2, %v3898_v2, 0.0 }
 0x243   :  { %v3081_v50 = vpop.f32.mrf.mxu1 }
 0x244   :  { %v1266_v42 = vmul.f32 %v3896_v4, %v3896_v4  ;;  %v3904_v11 = vadd.f32 %v3081_v50, %v2946_v18  ;;  %v1240_v14 = vsel %vm299_vm2, %v3896_v4, 0.0  ;;  %v1317_v19 = vsel %vm299_vm2, %v1272_v51, 0.0 }
 0x245   :  { %v1186_v17 = vpop.f32.mrf.mxu1 }
 0x246   :  { %v3906_v41 = vadd.f32 %v2940_v27, %v1186_v17  ;;  %v1314_v38 = vsel %vm299_vm2, %v1266_v42, 0.0  ;;  %v1275_v35 = vmul.f32 %v3904_v11, %v3904_v11  ;;  %v1245_v5 = vsel %vm299_vm2, %v3904_v11, 0.0 }
 0x247   :  { %v3084_v25 = vpop.f32.mrf.mxu1 }
 0x248   :  { %v1241_v44 = vsel %vm299_vm2, %v3906_v41, 0.0  ;;  %v1269_v63 = vmul.f32 %v3906_v41, %v3906_v41  ;;  %v3928_v54 = vadd.f32 %v3084_v25, %v2955_v24  ;;  %v3940_v24 = vsub.s32 1, %v3683_v12 }
 0x249   :  { %v1199_v56 = vpop.f32.mrf.mxu1  ;;  %v1242_v26 = vadd.f32 %v1241_v44, %v1240_v14 }
 0x24a   :  { %v3916_v28 = vadd.f32 %v2949_v6, %v1199_v56  ;;  %v1315_v33 = vsel %vm299_vm2, %v1269_v63, 0.0  ;;  %v1319_v6 = vsel %vm299_vm2, %v1275_v35, 0.0 }
 0x24b   :  { %v3085_v52 = vpop.f32.mrf.mxu1  ;;  %v1244_v30 = vadd.f32 %v1243_v60, %v1242_v26  ;;  %v1316_v20 = vadd.f32 %v1315_v33, %v1314_v38 }
 0x24c   :  { %v3314_v1 = vpop.eup %3313  ;;  %v1278_v55 = vmul.f32 %v3916_v28, %v3916_v28  ;;  %v1247_v51 = vsel %vm299_vm2, %v3916_v28, 0.0  ;;  %v3945_v60 = vadd.f32 %v3085_v52, %v2958_v13 }
 0x24d   :  { %v3316_v29 = vpop.eup %3315  ;;  %v1350_v3 = vmul.f32 %v3314_v1, %v3688_v23  ;;  %v1202_v50 = vpop.f32.mrf.mxu1  ;;  %v1318_v18 = vadd.f32 %v1317_v19, %v1316_v20  ;;  %v1246_v34 = vadd.f32 %v1245_v5, %v1244_v30  ;;  %v1284_v20 = vmul.f32 %v3928_v54, %v3928_v54 }
 0x24e   :  { %v1351_v27 = vmul.f32 %v3316_v29, %v3694_v32  ;;  %v3933_v9 = vadd.f32 %v2952_v39, %v1202_v50  ;;  %v1251_v39 = vsel %vm299_vm2, %v3928_v54, 0.0  ;;  %v1253_v5 = vsel %vm299_vm2, %v3945_v60, 0.0 }
 0x24f   :  { %v1353_v17 = vmul.f32 %v1350_v3, %v1261_v57  ;;  %v1380_v42 = vpack.c.bf16 %v1350_v3, %v1350_v3  ;;  %v1248_v44 = vadd.f32 %v1247_v51, %v1246_v34  ;;  %v1320_v63 = vadd.f32 %v1319_v6, %v1318_v18 }
 0x250   :  { %v1354_v25 = vmul.f32 %v1351_v27, %v3889_v53  ;;  %v1381_v14 = vpack.c.bf16 %v1351_v27, %v1351_v27  ;;  %v1321_v57 = vsel %vm299_vm2, %v1278_v55, 0.0  ;;  %v1249_v38 = vsel %vm299_vm2, %v3933_v9, 0.0 }
 0x251   :  { %v1359_v56 = vrot.slane %v1353_v17, 7  ;;  %v1384_v35 = vpack.i.b16 %v1380_v42, %v1380_v42  ;;  %v1322_v33 = vadd.f32 %v1321_v57, %v1320_v63  ;;  %v1250_v1 = vadd.f32 %v1249_v38, %v1248_v44 }
 0x252   :  { %v1360_v26 = vrot.slane %v1354_v25, 7  ;;  %v1391_v30 = vpack.i.b16 %v1381_v14, %v1381_v14  ;;  %v1281_v29 = vmul.f32 %v3933_v9, %v3933_v9  ;;  %v1325_v17 = vsel %vm299_vm2, %v1284_v20, 0.0 }
 0x253   :  { %v1365_v53 = vsub.f32 %v3688_v23, %v1359_v56  ;;  %v1252_v52 = vadd.f32 %v1251_v39, %v1250_v1  ;;  %v1287_v23 = vmul.f32 %v3945_v60, %v3945_v60  ;;  %v1368_v6 = vpack.c.bf16 %v3795_v59, %v3797_v61 }
 0x254   :  { %v1366_v19 = vsub.f32 %v3694_v32, %v1360_v26  ;;  %v1323_v55 = vsel %vm299_vm2, %v1281_v29, 0.0  ;;  %v3961_v32 = vrot.slane %v1384_v35, %v3940_v24  ;;  %v1396_v34 = vrot.slane %v1391_v30, %v3940_v24 }
 0x255   :  { %v1416_v3 = vpack.c.bf16 %v1365_v53, %v1365_v53  ;;  %v1254_v27 = vadd.f32 %v1253_v5, %v1252_v52  ;;  %v1324_v18 = vadd.f32 %v1323_v55, %v1322_v33  ;;  %v1369_v44 = vpack.c.bf16 %v3799_v37, %v3803_v15 }
 0x256   :  { %v1417_v13 = vpack.c.bf16 %v1366_v19, %v1366_v19  ;;  %v1372_v63 = vpack.c.bf16 %v3813_v31, %v3805_v22  ;;  %v1327_v56 = vsel %vm299_vm2, %v1287_v23, 0.0  ;;  %v1404_v53 = vmul.bf16 %v3961_v32, %v1368_v6 }
 0x257   :  { %v1420_v50 = vshrl.u32 %v1416_v3, 16  ;;  %v1255_v25 = vrot.slane %v1254_v27, 4  ;;  %v1326_v14 = vadd.f32 %v1325_v17, %v1324_v18  ;;  %v1405_v35 = vmul.bf16 %v1396_v34, %v1369_v44 }
 0x258   :  { %v1428_v42 = vshrl.u32 %v1417_v13, 16  ;;  %v1408_v61 = vmul.bf16 %v1396_v34, %v1372_v63  ;;  %v1375_v20 = vpack.c.bf16 %v3844_v36, %v3827_v40  ;;  %v1407_v5 = vmul.bf16 %v3961_v32, %v1371_v10  ;;  %v3267_v36 = vld [vmem:[#allocation5 + $0x1a0] ss:$12 sps:$4 sm:$0xff]  }
 0x259   :  { %v1421_v51 = vpack.i.b16 %v1420_v50, %v1420_v50  ;;  %v1256_v57 = vadd.f32 %v1255_v25, %v1254_v27  ;;  %v1328_v38 = vadd.f32 %v1327_v56, %v1326_v14  ;;  %v1875_v50 = vsel %vm928_vm1, %v3786_v58, 0  ;;  %v3271_v25 = vld [vmem:[#allocation5 + $0x188] ss:$12 sps:$4 sm:$0xff]  }
 0x25a   :  { %v1429_v39 = vpack.i.b16 %v1428_v42, %v1428_v42  ;;  %v1411_v55 = vmul.bf16 %v1396_v34, %v1375_v20  ;;  %v1410_v63 = vmul.bf16 %v3961_v32, %v1374_v21  ;;  %v1414_v56 = vmul.bf16 %v1396_v34, %v1378_v8 }
 0x25b   :  { %v1426_v26 = vrot.slane %v1421_v51, %v3940_v24  ;;  %v1257_v33 = vrot.slane %v1256_v57, 2  ;;  %v1329_v1 = vrot.slane %v1328_v38, 4  ;;  %v1413_v21 = vmul.bf16 %v3961_v32, %v1377_v45 }
 0x25c   :  { %v1434_v59 = vrot.slane %v1429_v39, %v3940_v24  ;;  %v1376_v20 = vpack.c.bf16 %v3933_v9, %v3916_v28  ;;  %v3274_v28 = vld [vmem:[#allocation5 + $0x158] ss:$12 sps:$4 sm:$0xff]  }
 0x25d   :  { %v1443_v19 = vadd.bf16 %v1426_v26, %v1404_v53  ;;  %v1258_v30 = vadd.f32 %v1257_v33, %v1256_v57  ;;  %v1330_v22 = vadd.f32 %v1329_v1, %v1328_v38  ;;  %v1446_v40 = vadd.bf16 %v1426_v26, %v1407_v5  ;;  %v4020_v1 = vld [vmem:[%s4279_s5 + $0x10] sm:$0xff] }
 0x25e   :  { %v1444_v37 = vadd.bf16 %v1434_v59, %v1405_v35  ;;  %v1447_v15 = vadd.bf16 %v1434_v59, %v1408_v61  ;;  %v1450_v6 = vadd.bf16 %v1434_v59, %v1411_v55  ;;  %v1449_v38 = vadd.bf16 %v1426_v26, %v1410_v63  ;;  %v3283_v63 = vld [vmem:[#allocation5 + $0x38] ss:$12 sps:$4 sm:$0xff]  }
 0x25f   :  { %v1455_v31 = vmul.bf16 1045249613, %v1443_v19  ;;  %v1259_v52 = vrot.slane %v1258_v30, 1  ;;  %v1331_v13 = vrot.slane %v1330_v22, 2  ;;  %v1458_v51 = vmul.bf16 1045249613, %v1446_v40 }
 0x260   :  { %v1456_v29 = vmul.bf16 1045249613, %v1444_v37  ;;  %v1459_v3 = vmul.bf16 1045249613, %v1447_v15  ;;  %v1462_v14 = vmul.bf16 1045249613, %v1450_v6  ;;  %v1453_v35 = vadd.bf16 %v1434_v59, %v1414_v56 }
 0x261   :  { %v1260_v27 = vadd.f32 %v1259_v52, %v1258_v30  ;;  %v1332_v18 = vadd.f32 %v1331_v13, %v1330_v22  ;;  %v3985_v17 = vmax.bf16 %v1455_v31, %v1443_v19  ;;  %v3999_v57 = vmax.bf16 %v1458_v51, %v1446_v40  ;;  %v3279_v51 = vld [vmem:[#allocation5 + $0x68] ss:$12 sps:$4 sm:$0xff]   ;;  %v3284_v56 = vld [vmem:[#allocation5 + $0xe0] ss:$12 sps:$4 sm:$0xff]  }
 0x262   :  { %v3981_v23 = vmax.bf16 %v1456_v29, %v1444_v37  ;;  %v3988_v42 = vmax.bf16 %v1459_v3, %v1447_v15  ;;  %v4001_v53 = vmax.bf16 %v1462_v14, %v1450_v6  ;;  %v1461_v7 = vmul.bf16 1045249613, %v1449_v38  ;;  %v3281_v14 = vld [vmem:[#allocation5 + $0x50] ss:$12 sps:$4 sm:$0xff]  }
 0x263   :  { %v1263_v43 = vmul.f32 0.015625, %v1260_v27  ;;  %v1333_v46 = vrot.slane %v1332_v18, 1  ;;  %v1465_v49 = vmul.bf16 1045249613, %v1453_v35  ;;  %v1452_v16 = vadd.bf16 %v1426_v26, %v1413_v21  ;;  %v3297_v21 = vld [vmem:[#allocation7 + $0x18] sm:$0xff]  }
 0x264   :  { %1909 = vmatprep.mubr.bf16.mxu0 %v3981_v23  ;;  %v4009_v48 = vmax.bf16 %v1461_v7, %v1449_v38  ;;  %v1373_v22 = vpack.c.bf16 %v3904_v11, %v3898_v2  ;;  %v1370_v31 = vpack.c.bf16 %v3906_v41, %v3896_v4  ;;  %v3286_v38 = vld [vmem:[#allocation5 + $0xc8] ss:$12 sps:$4 sm:$0xff]   ;;  %v3291_v7 = vld [vmem:[#allocation7 + $0x30] sm:$0xff]  }
 0x265   :  { %1910 = vmatmul.mubr.bf16.vlgmr.msra.gmra.mxu0 %v3985_v17  ;;  %v1334_v10 = vadd.f32 %v1333_v46, %v1332_v18  ;;  %v1340_v58 = vmul.f32 %v1263_v43, %v1263_v43  ;;  %v4011_v8 = vmax.bf16 %v1465_v49, %v1453_v35  ;;  %v1464_v34 = vmul.bf16 1045249613, %v1452_v16  ;;  %v3277_v46 = vld [vmem:[#allocation5 + $0x80] ss:$12 sps:$4 sm:$0xff]   ;;  %v3287_v35 = vld [vmem:[#allocation5 + $0x8] ss:$12 sps:$4 sm:$0xff]  }
 0x266   :  { %1919 = vmatprep.mubr.bf16.mxu0 %v3988_v42  ;;  %3087 = vmatpush3.bf16.msra.mxu0 %v1875_v50  ;;  %v1379_v18 = vpack.c.bf16 %v3945_v60, %v3928_v54  ;;  %v3276_v54 = vld [vmem:[#allocation5 + $0x140] ss:$12 sps:$4 sm:$0xff]  }
 0x267   :  { %3088 = vmatprep.subr.bf16.mxu0 %v3267_v36  ;;  %v1337_v44 = vmul.f32 0.015625, %v1334_v10  ;;  %v4015_v59 = vmax.bf16 %v1464_v34, %v1452_v16  ;;  %v3278_v10 = vld [vmem:[#allocation5 + $0x128] ss:$12 sps:$4 sm:$0xff]   ;;  %v3296_v49 = vld [vmem:[#allocation7 + $0x58] sm:$0xff]   ;;  %v3299_v16 = vld [vmem:[#allocation7 + $0x10] sm:$0xff]  }
 0x268   :  { %v3301_v34 = vld [vmem:[#allocation7 + $0x8] sm:$0xff]  }
 0x269   :  { %v1343_v39 = vsub.f32 %v1337_v44, %v1340_v58  ;;  %v3282_v44 = vld [vmem:[#allocation5 + $0xf8] ss:$12 sps:$4 sm:$0xff]  }
 0x26a   :  { %3089 = vmatpush3.bf16.msra.mxu0 %v3267_v36  ;;  %v3273_v36 = vld [vmem:[#allocation5 + $0xb0] ss:$12 sps:$4 sm:$0xff]  }
 0x26b   :  { %3090 = vmatprep.subr.bf16.mxu0 %v3271_v25  ;;  %v1346_v61 = vadd.f32 1e-05, %v1343_v39  ;;  %v3285_v39 = vld [vmem:[#allocation5 + $0x20] ss:$12 sps:$4 sm:$0xff]  }
 0x26d   :  { %1920 = vmatmul.mubr.bf16.gmra.mxu0 %v3999_v57  ;;  %3317 = vrsqrt.f32 %v1346_v61  ;;  %v3289_v61 = vld [vmem:[#allocation7 + $0x38] sm:$0xff]  }
 0x26e   :  { %1929 = vmatprep.mubr.bf16.mxu0 %v4001_v53  ;;  %3091 = vmatpush3.bf16.msra.mxu0 %v3271_v25  ;;  %v3280_v25 = vld [vmem:[#allocation5 + $0x110] ss:$12 sps:$4 sm:$0xff]  }
 0x275   :  { %1930 = vmatmul.mubr.bf16.gmra.mxu0 %v4009_v48 }
 0x276   :  { %1939 = vmatprep.mubr.bf16.mxu0 %v4011_v8 }
 0x27a   :  { %v3318_v33 = vpop.eup %3317 }
 0x27b   :  { %v1352_v62 = vmul.f32 %v4020_v1, %v3318_v33  ;;  %v3303_v33 = vld [vmem:[#allocation7] sm:$0xff]  }
 0x27d   :  { %1940 = vmatmul.mubr.bf16.gmra.mxu0 %v4015_v59  ;;  %v1355_v47 = vmul.f32 %v1352_v62, %v1263_v43  ;;  %v1382_v45 = vpack.c.bf16 %v1352_v62, %v1352_v62  ;;  %v3275_v43 = vld [vmem:[#allocation5 + $0x98] ss:$12 sps:$4 sm:$0xff]  }
 0x27f   :  { %v1361_v32 = vrot.slane %v1355_v47, 7  ;;  %v1398_v19 = vpack.i.b16 %v1382_v45, %v1382_v45 }
 0x281   :  { %v1367_v26 = vsub.f32 %v4020_v1, %v1361_v32  ;;  %v1403_v15 = vrot.slane %v1398_v19, %v3940_v24  ;;  %v3304_v19 = vld [vmem:[#allocation7 + $0x90] sm:$0x3f]  }
 0x282   :  { %3116 = vmatprep.subr.msk.bf16.mxu0 %vm928_vm1, %v3304_v19 }
 0x283   :  { %v1418_v37 = vpack.c.bf16 %v1367_v26, %v1367_v26  ;;  %v1412_v3 = vmul.bf16 %v1403_v15, %v1376_v20  ;;  %v1406_v13 = vmul.bf16 %v1403_v15, %v1370_v31  ;;  %v1409_v5 = vmul.bf16 %v1403_v15, %v1373_v22  ;;  %v3306_v22 = vld [vmem:[#allocation7 + $0x80] sm:$0xff]  }
 0x284   :  { %v1415_v4 = vmul.bf16 %v1403_v15, %v1379_v18  ;;  %v2586_v15 = vsel %vm928_vm1, %v3304_v19, 0 }
 0x285   :  { %v1436_v30 = vshrl.u32 %v1418_v37, 16 }
 0x287   :  { %v1437_v29 = vpack.i.b16 %v1436_v30, %v1436_v30  ;;  %v3305_v30 = vld [vmem:[#allocation7 + $0x88] sm:$0xff]  }
 0x289   :  { %v1442_v52 = vrot.slane %v1437_v29, %v3940_v24 }
 0x28b   :  { %v1451_v55 = vadd.bf16 %v1442_v52, %v1412_v3  ;;  %v1445_v50 = vadd.bf16 %v1442_v52, %v1406_v13  ;;  %v1448_v27 = vadd.bf16 %v1442_v52, %v1409_v5  ;;  %v1454_v9 = vadd.bf16 %v1442_v52, %v1415_v4 }
 0x28d   :  { %v1457_v40 = vmul.bf16 1045249613, %v1445_v50  ;;  %v1460_v2 = vmul.bf16 1045249613, %v1448_v27  ;;  %v1463_v11 = vmul.bf16 1045249613, %v1451_v55 }
 0x28e   :  { %v1466_v60 = vmul.bf16 1045249613, %v1454_v9 }
 0x28f   :  { %v1469_v41 = vmax.bf16 %v1457_v40, %v1445_v50  ;;  %v1472_v6 = vmax.bf16 %v1460_v2, %v1448_v27  ;;  %v1475_v24 = vmax.bf16 %v1463_v11, %v1451_v55 }
 0x290   :  { %v1478_v58 = vmax.bf16 %v1466_v60, %v1454_v9 }
 0x291   :  { %2882 = vmatmul.mubr.msk.bf16.vlgmr.msra.gmra.mxu1 %vm299_vm2, %v1469_v41  ;;  %3092 = vmatprep.mubr.msk.bf16.mxu0 %vm299_vm2, %v1469_v41 }
 0x292   :  { %2967 = vmatpush3.bf16.msra.mxu1 %v3273_v36  ;;  %3093 = vmatmul.mubr.msk.bf16.vlgmr.msra.gmra.mxu0 %vm299_vm2, %v1472_v6 }
 0x293   :  { %3096 = vmatprep.mubr.msk.bf16.mxu0 %vm299_vm2, %v1475_v24  ;;  %2968 = vmatprep.subr.bf16.mxu1 %v3274_v28 }
 0x294   :  { %1992 = vmatprep.mubr.bf16.mxu1 %v3421_v0  ;;  %3101 = vmatpush3.bf16.msra.mxu0 %v2586_v15 }
 0x295   :  { %3102 = vmatprep.subr.bf16.mxu0 %v3305_v30 }
 0x296   :  { %2969 = vmatpush3.bf16.msra.mxu1 %v3275_v43 }
 0x297   :  { %2970 = vmatprep.subr.bf16.mxu1 %v3276_v54 }
 0x298   :  { %3103 = vmatpush3.bf16.msra.mxu0 %v3305_v30 }
 0x299   :  { %2883 = vmatmul.mubr.msk.bf16.gmra.mxu1 %vm299_vm2, %v1472_v6  ;;  %3104 = vmatprep.subr.bf16.mxu0 %v3306_v22 }
 0x29a   :  { %2971 = vmatpush3.bf16.msra.mxu1 %v3277_v46  ;;  %3097 = vmatmul.mubr.msk.bf16.gmra.mxu0 %vm299_vm2, %v1478_v58 }
 0x29b   :  { %2972 = vmatprep.subr.bf16.mxu1 %v3278_v10  ;;  %2002 = vmatprep.mubr.bf16.mxu1 %v3421_v0 }
 0x29c   :  { %3105 = vmatpush3.bf16.msra.mxu0 %v3306_v22 }
 0x29e   :  { %2973 = vmatpush3.bf16.msra.mxu1 %v3279_v51 }
 0x29f   :  { %2974 = vmatprep.subr.bf16.mxu1 %v3280_v25 }
 0x2a1   :  { %2884 = vmatmul.mubr.msk.bf16.gmra.mxu1 %vm299_vm2, %v1475_v24 }
 0x2a2   :  { %2975 = vmatpush3.bf16.msra.mxu1 %v3281_v14  ;;  %2012 = vmatprep.mubr.bf16.mxu1 %v3421_v0  ;;  %v3288_v0 = vld [vmem:[#allocation7 + $0x78] sm:$0xff]  }
 0x2a3   :  { %2976 = vmatprep.subr.bf16.mxu1 %v3282_v44 }
 0x2a6   :  { %2977 = vmatpush3.bf16.msra.mxu1 %v3283_v63 }
 0x2a7   :  { %2978 = vmatprep.subr.bf16.mxu1 %v3284_v56 }
 0x2a9   :  { %2885 = vmatmul.mubr.msk.bf16.gmra.mxu1 %vm299_vm2, %v1478_v58 }
 0x2aa   :  { %2979 = vmatpush3.bf16.msra.mxu1 %v3285_v39  ;;  %2055 = vmatprep.mubr.bf16.mxu1 %v3981_v23  ;;  %v3290_v23 = vld [vmem:[#allocation7 + $0x70] sm:$0xff]  }
 0x2ab   :  { %2980 = vmatprep.subr.bf16.mxu1 %v3286_v38 }
 0x2ae   :  { %2981 = vmatpush3.bf16.msra.mxu1 %v3287_v35 }
 0x2af   :  { %3013 = vmatprep.subr.bf16.mxu1 %v3288_v0 }
 0x2b1   :  { %2056 = vmatmul.mubr.bf16.vlgmr.msra.gmra.mxu1 %v3985_v17  ;;  %v3292_v17 = vld [vmem:[#allocation7 + $0x68] sm:$0xff]  }
 0x2b2   :  { %2063 = vmatprep.mubr.bf16.mxu1 %v3988_v42  ;;  %3014 = vmatpush3.bf16.msra.mxu1 %v3289_v61  ;;  %v3293_v42 = vld [vmem:[#allocation7 + $0x28] sm:$0xff]  }
 0x2b3   :  { %3015 = vmatprep.subr.bf16.mxu1 %v3290_v23 }
 0x2b6   :  { %3016 = vmatpush3.bf16.msra.mxu1 %v3291_v7 }
 0x2b7   :  { %3017 = vmatprep.subr.bf16.mxu1 %v3292_v17 }
 0x2b9   :  { %2064 = vmatmul.mubr.bf16.gmra.mxu1 %v3999_v57  ;;  %v3294_v57 = vld [vmem:[#allocation7 + $0x60] sm:$0xff]  }
 0x2ba   :  { %2071 = vmatprep.mubr.bf16.mxu1 %v4001_v53  ;;  %3018 = vmatpush3.bf16.msra.mxu1 %v3293_v42  ;;  %v3295_v53 = vld [vmem:[#allocation7 + $0x20] sm:$0xff]  }
 0x2bb   :  { %3019 = vmatprep.subr.bf16.mxu1 %v3294_v57 }
 0x2be   :  { %3020 = vmatpush3.bf16.msra.mxu1 %v3295_v53 }
 0x2bf   :  { %3021 = vmatprep.subr.bf16.mxu1 %v3296_v49 }
 0x2c1   :  { %2072 = vmatmul.mubr.bf16.gmra.mxu1 %v4009_v48  ;;  %v3298_v48 = vld [vmem:[#allocation7 + $0x50] sm:$0xff]  }
 0x2c2   :  { %2079 = vmatprep.mubr.bf16.mxu1 %v4011_v8  ;;  %3022 = vmatpush3.bf16.msra.mxu1 %v3297_v21  ;;  %v3300_v8 = vld [vmem:[#allocation7 + $0x48] sm:$0xff]  }
 0x2c3   :  { %3023 = vmatprep.subr.bf16.mxu1 %v3298_v48 }
 0x2c6   :  { %3024 = vmatpush3.bf16.msra.mxu1 %v3299_v16 }
 0x2c7   :  { %3025 = vmatprep.subr.bf16.mxu1 %v3300_v8 }
 0x2c9   :  { %2080 = vmatmul.mubr.bf16.gmra.mxu1 %v4015_v59  ;;  %v3302_v59 = vld [vmem:[#allocation7 + $0x40] sm:$0xff]  }
 0x2ca   :  { %3026 = vmatpush3.bf16.msra.mxu1 %v3301_v34 }
 0x2cb   :  { %3027 = vmatprep.subr.bf16.mxu1 %v3302_v59 }
 0x2ce   :  { %3028 = vmatpush3.bf16.msra.mxu1 %v3303_v33 }
 0x325   :  { %v1911_v62 = vpop.f32.mrf.mxu0 }
 0x327   :  { %v1913_v47 = vpop.f32.mrf.mxu0 }
 0x329   :  { %v1915_v45 = vpop.f32.mrf.mxu0 }
 0x32b   :  { %v1917_v32 = vpop.f32.mrf.mxu0 }
 0x32d   :  { %v1921_v26 = vpop.f32.mrf.mxu0 }
 0x32f   :  { %v1923_v37 = vpop.f32.mrf.mxu0 }
 0x331   :  { %v1925_v31 = vpop.f32.mrf.mxu0 }
 0x333   :  { %v1927_v20 = vpop.f32.mrf.mxu0 }
 0x335   :  { %v1931_v29 = vpop.f32.mrf.mxu0 }
 0x337   :  { %v1933_v52 = vpop.f32.mrf.mxu0 }
 0x339   :  { %v1935_v55 = vpop.f32.mrf.mxu0 }
 0x33b   :  { %v1937_v18 = vpop.f32.mrf.mxu0 }
 0x33d   :  { %v1941_v41 = vpop.f32.mrf.mxu0 }
 0x33f   :  { %v1943_v60 = vpop.f32.mrf.mxu0 }
 0x341   :  { %v1945_v23 = vpop.f32.mrf.mxu0 }
 0x343   :  { %v1947_v19 = vpop.f32.mrf.mxu0 }
 0x351   :  { %v1984_v3 = vpop.f32.mrf.mxu1 }
 0x352   :  { %v4062_v28 = vadd.f32 %v1984_v3, %v1911_v62 }
 0x353   :  { %v1986_v13 = vpop.f32.mrf.mxu1 }
 0x354   :  { %v4070_v46 = vadd.f32 %v1986_v13, %v1913_v47  ;;  %v2203_v51 = vmul.f32 %v4062_v28, %v4062_v28 }
 0x355   :  { %v1988_v5 = vpop.f32.mrf.mxu1 }
 0x356   :  { %v4056_v11 = vadd.f32 %v1988_v5, %v1915_v45  ;;  %v2204_v7 = vmul.f32 %v4070_v46, %v4070_v46 }
 0x357   :  { %v1990_v50 = vpop.f32.mrf.mxu1 }
 0x358   :  { %v4066_v24 = vadd.f32 %v1990_v50, %v1917_v32  ;;  %v2206_v54 = vmul.f32 %v4056_v11, %v4056_v11  ;;  %v2153_v25 = vadd.f32 %v4056_v11, %v4062_v28 }
 0x359   :  { %v1994_v27 = vpop.f32.mrf.mxu1 }
 0x35a   :  { %v4058_v36 = vadd.f32 %v1994_v27, %v1921_v26  ;;  %v2207_v63 = vmul.f32 %v4066_v24, %v4066_v24  ;;  %v2227_v38 = vadd.f32 %v2206_v54, %v2203_v51  ;;  %v2166_v17 = vadd.f32 %v4066_v24, %v4070_v46 }
 0x35b   :  { %v1996_v40 = vpop.f32.mrf.mxu1 }
 0x35c   :  { %v4072_v10 = vadd.f32 %v1996_v40, %v1923_v37  ;;  %v2209_v14 = vmul.f32 %v4058_v36, %v4058_v36  ;;  %v2154_v35 = vadd.f32 %v2153_v25, %v4058_v36  ;;  %v2240_v8 = vadd.f32 %v2207_v63, %v2204_v7 }
 0x35d   :  { %v1998_v2 = vpop.f32.mrf.mxu1 }
 0x35e   :  { %v4060_v4 = vadd.f32 %v1998_v2, %v1925_v31  ;;  %v2210_v42 = vmul.f32 %v4072_v10, %v4072_v10  ;;  %v2228_v49 = vadd.f32 %v2227_v38, %v2209_v14  ;;  %v2167_v34 = vadd.f32 %v2166_v17, %v4072_v10 }
 0x35f   :  { %v2000_v6 = vpop.f32.mrf.mxu1 }
 0x360   :  { %v2310_v9 = vpack.c.bf16 %v4060_v4, %v4058_v36  ;;  %v4084_v56 = vadd.f32 %v2000_v6, %v1927_v20  ;;  %v2212_v0 = vmul.f32 %v4060_v4, %v4060_v4  ;;  %v2155_v21 = vadd.f32 %v2154_v35, %v4060_v4 }
 0x361   :  { %v2004_v43 = vpop.f32.mrf.mxu1  ;;  %v2241_v37 = vadd.f32 %v2240_v8, %v2210_v42 }
 0x362   :  { %v4080_v44 = vadd.f32 %v2004_v43, %v1931_v29  ;;  %v2213_v59 = vmul.f32 %v4084_v56, %v4084_v56  ;;  %v2229_v47 = vadd.f32 %v2228_v49, %v2212_v0  ;;  %v2168_v15 = vadd.f32 %v2167_v34, %v4084_v56 }
 0x363   :  { %v2006_v58 = vpop.f32.mrf.mxu1 }
 0x364   :  { %v4097_v57 = vadd.f32 %v2006_v58, %v1933_v52  ;;  %v2215_v48 = vmul.f32 %v4080_v44, %v4080_v44  ;;  %v2156_v45 = vadd.f32 %v2155_v21, %v4080_v44  ;;  %v4122_v52 = vpop.f32.mrf.mxu0  ;;  %v2242_v13 = vadd.f32 %v2241_v37, %v2213_v59 }
 0x365   :  { %v2008_v39 = vpop.f32.mrf.mxu1 }
 0x366   :  { %v4089_v61 = vadd.f32 %v2008_v39, %v1935_v55  ;;  %v2216_v30 = vmul.f32 %v4097_v57, %v4097_v57  ;;  %v2230_v31 = vadd.f32 %v2229_v47, %v2215_v48  ;;  %v2169_v5 = vadd.f32 %v2168_v15, %v4097_v57  ;;  %v2122_v25 = vpop.f32.mrf.mxu0 }
 0x367   :  { %v2010_v53 = vpop.f32.mrf.mxu1 }
 0x368   :  { %v2313_v16 = vpack.c.bf16 %v4089_v61, %v4080_v44  ;;  %v4107_v33 = vadd.f32 %v2010_v53, %v1937_v18  ;;  %v2218_v32 = vmul.f32 %v4089_v61, %v4089_v61  ;;  %v2157_v20 = vadd.f32 %v2156_v45, %v4089_v61  ;;  %v3095_v48 = vpop.f32.mrf.mxu0 }
 0x369   :  { %v2014_v62 = vpop.f32.mrf.mxu1  ;;  %v2243_v2 = vadd.f32 %v2242_v13, %v2216_v30 }
 0x36a   :  { %v4112_v26 = vadd.f32 %v2014_v62, %v1941_v41  ;;  %v2219_v55 = vmul.f32 %v4107_v33, %v4107_v33  ;;  %v2231_v27 = vadd.f32 %v2230_v31, %v2218_v32  ;;  %v2170_v41 = vadd.f32 %v2169_v5, %v4107_v33  ;;  %v2125_v30 = vpop.f32.mrf.mxu0 }
 0x36b   :  { %v2016_v22 = vpop.f32.mrf.mxu1 }
 0x36c   :  { %v2221_v29 = vmul.f32 %v4112_v26, %v4112_v26  ;;  %v4120_v3 = vadd.f32 %v2016_v22, %v1943_v60  ;;  %v2158_v18 = vadd.f32 %v2157_v20, %v4112_v26  ;;  %v2244_v14 = vadd.f32 %v2243_v2, %v2219_v55 }
 0x36d   :  { %v2018_v50 = vpop.f32.mrf.mxu1 }
 0x36e   :  { %v4128_v40 = vadd.f32 %v2018_v50, %v1945_v23  ;;  %v2222_v6 = vmul.f32 %v4120_v3, %v4120_v3  ;;  %v2232_v54 = vadd.f32 %v2231_v27, %v2221_v29  ;;  %v2171_v63 = vadd.f32 %v2170_v41, %v4120_v3  ;;  %v4146_v41 = vpop.f32.mrf.mxu0 }
 0x36f   :  { %v2020_v43 = vpop.f32.mrf.mxu1 }
 0x370   :  { %v2159_v60 = vadd.f32 %v2158_v18, %v4128_v40  ;;  %v2224_v58 = vmul.f32 %v4128_v40, %v4128_v40  ;;  %v2316_v51 = vpack.c.bf16 %v4128_v40, %v4112_v26  ;;  %v4139_v39 = vadd.f32 %v2020_v43, %v1947_v19 }
 0x371   :  { %v2982_v38 = vpop.f32.mrf.mxu1  ;;  %v2245_v23 = vadd.f32 %v2244_v14, %v2222_v6 }
 0x372   :  { %v2160_v35 = vrot.slane %v2159_v60, 4  ;;  %v2233_v0 = vadd.f32 %v2232_v54, %v2224_v58  ;;  %v2172_v7 = vadd.f32 %v2171_v63, %v4139_v39  ;;  %v2225_v17 = vmul.f32 %v4139_v39, %v4139_v39 }
 0x373   :  { %v2317_v42 = vpack.c.bf16 %v4139_v39, %v4120_v3  ;;  %v2983_v53 = vpop.f32.mrf.mxu1 }
 0x374   :  { %v2161_v49 = vadd.f32 %v2160_v35, %v2159_v60  ;;  %v2234_v21 = vrot.slane %v2233_v0, 4  ;;  %v2173_v8 = vrot.slane %v2172_v7, 4  ;;  %v2246_v34 = vadd.f32 %v2245_v23, %v2225_v17 }
 0x375   :  { %v2985_v59 = vpop.f32.mrf.mxu1  ;;  %v2984_v54 = vadd.f32 %v2983_v53, %v2982_v38 }
 0x376   :  { %v2162_v62 = vrot.slane %v2161_v49, 2  ;;  %v2235_v47 = vadd.f32 %v2234_v21, %v2233_v0  ;;  %v2174_v45 = vadd.f32 %v2173_v8, %v2172_v7  ;;  %v2247_v32 = vrot.slane %v2246_v34, 4  ;;  %v2138_v8 = vpop.f32.mrf.mxu0 }
 0x377   :  { %v2986_v19 = vpop.f32.mrf.mxu1  ;;  %v4156_v38 = vadd.f32 %v2984_v54, %v2122_v25 }
 0x378   :  { %v2163_v37 = vadd.f32 %v2162_v62, %v2161_v49  ;;  %v2236_v15 = vrot.slane %v2235_v47, 2  ;;  %v2175_v22 = vrot.slane %v2174_v45, 2  ;;  %v2248_v31 = vadd.f32 %v2247_v32, %v2246_v34 }
 0x379   :  { %v2988_v20 = vpop.f32.mrf.mxu1  ;;  %v2987_v2 = vadd.f32 %v2986_v19, %v2985_v59  ;;  %v2205_v25 = vmul.f32 %v4156_v38, %v4156_v38 }
 0x37a   :  { %v2164_v29 = vrot.slane %v2163_v37, 1  ;;  %v2237_v13 = vadd.f32 %v2236_v15, %v2235_v47  ;;  %v2176_v5 = vadd.f32 %v2175_v22, %v2174_v45  ;;  %v2249_v55 = vrot.slane %v2248_v31, 2  ;;  %v3099_v22 = vpop.f32.mrf.mxu0 }
 0x37b   :  { %v2989_v50 = vpop.f32.mrf.mxu1  ;;  %v4152_v49 = vadd.f32 %v2987_v2, %v2125_v30  ;;  %v2253_v54 = vsel %vm299_vm2, %v2205_v25, 0.0 }
 0x37c   :  { %v2165_v27 = vadd.f32 %v2164_v29, %v2163_v37  ;;  %v2238_v18 = vrot.slane %v2237_v13, 1  ;;  %v2177_v6 = vrot.slane %v2176_v5, 1  ;;  %v2250_v43 = vadd.f32 %v2249_v55, %v2248_v31 }
 0x37d   :  { %v2991_v60 = vpop.f32.mrf.mxu1  ;;  %v2990_v63 = vadd.f32 %v2989_v50, %v2988_v20  ;;  %v2208_v15 = vmul.f32 %v4152_v49, %v4152_v49  ;;  %v2179_v55 = vsel %vm299_vm2, %v4156_v38, 0.0  ;;  %v2309_v26 = vpack.c.bf16 %v4152_v49, %v4156_v38 }
 0x37e   :  { %v4148_v58 = vmul.f32 0.015625, %v2165_v27  ;;  %v2239_v14 = vadd.f32 %v2238_v18, %v2237_v13  ;;  %v2178_v35 = vadd.f32 %v2177_v6, %v2176_v5  ;;  %v2251_v0 = vrot.slane %v2250_v43, 1 }
 0x37f   :  { %v2992_v23 = vpop.f32.mrf.mxu1  ;;  %v4159_v47 = vadd.f32 %v4122_v52, %v2990_v63  ;;  %v2180_v52 = vsel %vm299_vm2, %v4152_v49, 0.0  ;;  %v2254_v27 = vsel %vm299_vm2, %v2208_v15, 0.0 }
 0x380   :  { %v2274_v7 = vmul.f32 0.015625, %v2239_v14  ;;  %v2277_v17 = vmul.f32 %v4148_v58, %v4148_v58  ;;  %v2993_v21 = vadd.f32 %v2992_v23, %v2991_v60  ;;  %v4154_v34 = vmul.f32 0.015625, %v2178_v35 }
 0x381   :  { %v2252_v59 = vadd.f32 %v2251_v0, %v2250_v43  ;;  %v2994_v53 = vpop.f32.mrf.mxu1  ;;  %v2211_v13 = vmul.f32 %v4159_v47, %v4159_v47  ;;  %v2182_v18 = vsel %vm299_vm2, %v4159_v47, 0.0  ;;  %v2141_v43 = vpop.f32.mrf.mxu0  ;;  %v2181_v60 = vadd.f32 %v2180_v52, %v2179_v55 }
 0x382   :  { %v2280_v62 = vsub.f32 %v2274_v7, %v2277_v17  ;;  %v2278_v32 = vmul.f32 %v4154_v34, %v4154_v34  ;;  %v4165_v30 = vadd.f32 %v3095_v48, %v2993_v21  ;;  %v2255_v7 = vadd.f32 %v2254_v27, %v2253_v54  ;;  %v4212_v54 = vld [vmem:[%s4279_s5] sm:$0xff] }
 0x383   :  { %v2275_v45 = vmul.f32 0.015625, %v2252_v59  ;;  %v2995_v19 = vpop.f32.mrf.mxu1  ;;  %v2256_v63 = vsel %vm299_vm2, %v2211_v13, 0.0  ;;  %v2183_v17 = vadd.f32 %v2182_v18, %v2181_v60 }
 0x384   :  { %v2283_v37 = vadd.f32 1e-05, %v2280_v62  ;;  %v2996_v20 = vadd.f32 %v2995_v19, %v2994_v53  ;;  %v2214_v2 = vmul.f32 %v4165_v30, %v4165_v30  ;;  %v2184_v35 = vsel %vm299_vm2, %v4165_v30, 0.0 }
 0x385   :  { %v2281_v31 = vsub.f32 %v2275_v45, %v2278_v32  ;;  %v2997_v29 = vpop.f32.mrf.mxu1  ;;  %v2257_v62 = vadd.f32 %v2256_v63, %v2255_v7  ;;  %v2185_v45 = vadd.f32 %v2184_v35, %v2183_v17  ;;  %v2312_v40 = vpack.c.bf16 %v4165_v30, %v4159_v47 }
 0x386   :  { %3319 = vrsqrt.f32 %v2283_v37  ;;  %v4175_v48 = vadd.f32 %v2996_v20, %v2138_v8  ;;  %v2258_v8 = vsel %vm299_vm2, %v2214_v2, 0.0 }
 0x387   :  { %v2284_v5 = vadd.f32 1e-05, %v2281_v31  ;;  %v2998_v50 = vpop.f32.mrf.mxu1  ;;  %v2259_v31 = vadd.f32 %v2258_v8, %v2257_v62  ;;  %v3327_v8 = vld [vmem:[%s4279_s5 + $0x8] sm:$0xff]  ;;  %s3422_s5 = smov [#allocation8]  }
 0x388   :  { %v2999_v6 = vadd.f32 %v2998_v50, %v2997_v29  ;;  %v2217_v0 = vmul.f32 %v4175_v48, %v4175_v48  ;;  %v2186_v59 = vsel %vm299_vm2, %v4175_v48, 0.0  ;;  %s2731_s24 = sshll.u32 %s3422_s5, 4  ;;  %s2732_s24 = int_to_ptr.vmem [resolvable:$true] %s2731_s24 }
 0x389   :  { %3321 = vrsqrt.f32 %v2284_v5  ;;  %v3000_v14 = vpop.f32.mrf.mxu1  ;;  %v2187_v25 = vadd.f32 %v2186_v59, %v2185_v45  ;;  %s3388_s25 = scalar_lea.vmem %s2732_s24, 1024  ;;  %p3393_p2 = scmp.lt.s32.totalorder %s2732_s24, %s2732_s24 }
 0x38a   :  { %v4188_v23 = vadd.f32 %v2999_v6, %v2141_v43  ;;  %v2260_v37 = vsel %vm299_vm2, %v2217_v0, 0.0  ;;  %p3389_p1 = scmp.ne.s32.totalorder %s2732_s24, %s3388_s25  ;;  %p3394_p3 = scmp.lt.s32.totalorder %s3388_s25, %s3388_s25 }
 0x38b   :  { %v3001_v21 = vpop.f32.mrf.mxu1  ;;  %v2261_v5 = vadd.f32 %v2260_v37, %v2259_v31 }
 0x38c   :  { %v2220_v53 = vmul.f32 %v4188_v23, %v4188_v23  ;;  %v3002_v32 = vadd.f32 %v3001_v21, %v3000_v14  ;;  %v2188_v15 = vsel %vm299_vm2, %v4188_v23, 0.0  ;;  %p3395_p4 = por %p3394_p3, %p3393_p2 }
 0x38d   :  { %v3003_v19 = vpop.f32.mrf.mxu1  ;;  %v2189_v55 = vadd.f32 %v2188_v15, %v2187_v25 }
 0x38e   :  { %v4199_v20 = vadd.f32 %v4146_v41, %v3002_v32  ;;  %v2262_v52 = vsel %vm299_vm2, %v2220_v53, 0.0  ;;  %p3396_p5 = pnand %p3395_p4, %p3389_p1 }
 0x38f   :  { %v3004_v29 = vpop.f32.mrf.mxu1  ;;  %v2263_v6 = vadd.f32 %v2262_v52, %v2261_v5 }
 0x390   :  { %v3005_v13 = vadd.f32 %v3004_v29, %v3003_v19  ;;  %v2190_v50 = vsel %vm299_vm2, %v4199_v20, 0.0  ;;  %v2223_v27 = vmul.f32 %v4199_v20, %v4199_v20 }
 0x391   :  { %v2191_v43 = vadd.f32 %v2190_v50, %v2189_v55 }
 0x392   :  { %v4206_v18 = vadd.f32 %v3099_v22, %v3005_v13  ;;  %v2264_v41 = vsel %vm299_vm2, %v2223_v27, 0.0 }
 0x393   :  { %v3320_v2 = vpop.eup %3319  ;;  %v2265_v22 = vadd.f32 %v2264_v41, %v2263_v6 }
 0x394   :  { %v2289_v60 = vmul.f32 %v4212_v54, %v3320_v2  ;;  %v2192_v14 = vsel %vm299_vm2, %v4206_v18, 0.0  ;;  %v2226_v63 = vmul.f32 %v4206_v18, %v4206_v18 }
 0x395   :  { %v2193_v35 = vadd.f32 %v2192_v14, %v2191_v43  ;;  %v2307_v14 = vpack.c.bf16 %v4056_v11, %v4062_v28 }
 0x396   :  { %v3322_v0 = vpop.eup %3321  ;;  %v2292_v7 = vmul.f32 %v2289_v60, %v4148_v58  ;;  %v2319_v17 = vpack.c.bf16 %v2289_v60, %v2289_v60  ;;  %v2266_v21 = vsel %vm299_vm2, %v2226_v63, 0.0  ;;  %v4227_v58 = vsub.s32 2, %v3683_v12 }
 0x397   :  { %v2290_v59 = vmul.f32 %v3327_v8, %v3322_v0  ;;  %v2194_v53 = vrot.slane %v2193_v35, 4  ;;  %v2267_v62 = vadd.f32 %v2266_v21, %v2265_v22 }
 0x398   :  { %v2298_v45 = vrot.slane %v2292_v7, 7  ;;  %v2323_v25 = vpack.i.b16 %v2319_v17, %v2319_v17  ;;  %v2308_v17 = vpack.c.bf16 %v4066_v24, %v4070_v46  ;;  %v2314_v46 = vpack.c.bf16 %v4107_v33, %v4097_v57 }
 0x399   :  { %v2293_v32 = vmul.f32 %v2290_v59, %v4154_v34  ;;  %v2320_v19 = vpack.c.bf16 %v2290_v59, %v2290_v59  ;;  %v2195_v37 = vadd.f32 %v2194_v53, %v2193_v35  ;;  %v2268_v15 = vrot.slane %v2267_v62, 4 }
 0x39a   :  { %v2304_v31 = vsub.f32 %v4212_v54, %v2298_v45  ;;  %v2328_v6 = vrot.slane %v2323_v25, %v4227_v58  ;;  %v2311_v59 = vpack.c.bf16 %v4084_v56, %v4072_v10 }
 0x39b   :  { %v2299_v29 = vrot.slane %v2293_v32, 7  ;;  %v2196_v52 = vrot.slane %v2195_v37, 2  ;;  %v2269_v13 = vadd.f32 %v2268_v15, %v2267_v62  ;;  %v2330_v55 = vpack.i.b16 %v2320_v19, %v2320_v19 }
 0x39c   :  { %v2355_v5 = vpack.c.bf16 %v2304_v31, %v2304_v31  ;;  %v2346_v56 = vmul.bf16 %v2328_v6, %v2310_v9  ;;  %v2349_v57 = vmul.bf16 %v2328_v6, %v2313_v16  ;;  %v2352_v44 = vmul.bf16 %v2328_v6, %v2316_v51 }
 0x39d   :  { %v2305_v50 = vsub.f32 %v3327_v8, %v2299_v29  ;;  %v2197_v27 = vadd.f32 %v2196_v52, %v2195_v37  ;;  %v2270_v2 = vrot.slane %v2269_v13, 2  ;;  %v2335_v22 = vrot.slane %v2330_v55, %v4227_v58 }
 0x39e   :  { %v2359_v34 = vshrl.u32 %v2355_v5, 16  ;;  %v2343_v8 = vmul.bf16 %v2328_v6, %v2307_v14  ;;  %v2315_v51 = vpack.c.bf16 %v4188_v23, %v4175_v48 }
 0x39f   :  { %v2356_v43 = vpack.c.bf16 %v2305_v50, %v2305_v50  ;;  %v2198_v41 = vrot.slane %v2197_v27, 1  ;;  %v2271_v60 = vadd.f32 %v2270_v2, %v2269_v13  ;;  %v2344_v32 = vmul.bf16 %v2335_v22, %v2308_v17 }
 0x3a0   :  { %v2360_v63 = vpack.i.b16 %v2359_v34, %v2359_v34  ;;  %v2347_v15 = vmul.bf16 %v2335_v22, %v2311_v59  ;;  %v2350_v55 = vmul.bf16 %v2335_v22, %v2314_v46  ;;  %v2353_v36 = vmul.bf16 %v2335_v22, %v2317_v42 }
 0x3a1   :  { %v2199_v35 = vadd.f32 %v2198_v41, %v2197_v27  ;;  %v2272_v0 = vrot.slane %v2271_v60, 1  ;;  %v2367_v7 = vshrl.u32 %v2356_v43, 16 }
 0x3a2   :  { %v2365_v21 = vrot.slane %v2360_v63, %v4227_v58 }
 0x3a3   :  { %v2202_v53 = vmul.f32 0.015625, %v2199_v35  ;;  %v2273_v62 = vadd.f32 %v2272_v0, %v2271_v60  ;;  %v2368_v45 = vpack.i.b16 %v2367_v7, %v2367_v7 }
 0x3a4   :  { %v2382_v11 = vadd.bf16 %v2365_v21, %v2343_v8  ;;  %v2385_v27 = vadd.bf16 %v2365_v21, %v2346_v56  ;;  %v2388_v9 = vadd.bf16 %v2365_v21, %v2349_v57  ;;  %v2391_v3 = vadd.bf16 %v2365_v21, %v2352_v44 }
 0x3a5   :  { %v2276_v28 = vmul.f32 0.015625, %v2273_v62  ;;  %v2279_v19 = vmul.f32 %v2202_v53, %v2202_v53  ;;  %v2373_v37 = vrot.slane %v2368_v45, %v4227_v58 }
 0x3a6   :  { %v2394_v24 = vmul.bf16 1045249613, %v2382_v11  ;;  %v2397_v43 = vmul.bf16 1045249613, %v2385_v27  ;;  %v2400_v63 = vmul.bf16 1045249613, %v2388_v9 }
 0x3a7   :  { %v2282_v31 = vsub.f32 %v2276_v28, %v2279_v19  ;;  %v2383_v25 = vadd.bf16 %v2373_v37, %v2344_v32  ;;  %v2386_v29 = vadd.bf16 %v2373_v37, %v2347_v15  ;;  %v2389_v34 = vadd.bf16 %v2373_v37, %v2350_v55 }
 0x3a8   :  { %v2406_v50 = vmax.bf16 %v2394_v24, %v2382_v11  ;;  %v2409_v4 = vmax.bf16 %v2397_v43, %v2385_v27  ;;  %v2392_v60 = vadd.bf16 %v2373_v37, %v2353_v36  ;;  %v2412_v7 = vmax.bf16 %v2400_v63, %v2388_v9 }
 0x3a9   :  { %v2285_v52 = vadd.f32 1e-05, %v2282_v31  ;;  %v2395_v13 = vmul.bf16 1045249613, %v2383_v25  ;;  %v2398_v10 = vmul.bf16 1045249613, %v2386_v29  ;;  %v2318_v15 = vpack.c.bf16 %v4206_v18, %v4199_v20 }
 0x3aa   :  { %v2401_v41 = vmul.bf16 1045249613, %v2389_v34  ;;  %v2404_v0 = vmul.bf16 1045249613, %v2392_v60  ;;  %v2403_v8 = vmul.bf16 1045249613, %v2391_v3 }
 0x3ab   :  { %3323 = vrsqrt.f32 %v2285_v52  ;;  %v2407_v5 = vmax.bf16 %v2395_v13, %v2383_v25  ;;  %v2410_v2 = vmax.bf16 %v2398_v10, %v2386_v29 }
 0x3ac   :  { %v2413_v33 = vmax.bf16 %v2401_v41, %v2389_v34  ;;  %v2416_v42 = vmax.bf16 %v2404_v0, %v2392_v60  ;;  %v2415_v32 = vmax.bf16 %v2403_v8, %v2391_v3  ;;  %v2458_v34 = vsub.s32 6, %v3683_v12 }
 0x3ad   :  { %2620 = vmatprep.mubr.bf16.mxu1 %v2407_v5 }
 0x3ae   :  { %2621 = vmatmul.mubr.bf16.vlgmr.msra.gmra.mxu1 %v2406_v50  ;;  %v2459_v36 = vrot.slane %v4212_v54, %v2458_v34 }
 0x3af   :  { %2628 = vmatprep.mubr.bf16.mxu1 %v2410_v2 }
 0x3b6   :  { %2629 = vmatmul.mubr.bf16.gmra.mxu1 %v2409_v4 }
 0x3b7   :  { %2636 = vmatprep.mubr.bf16.mxu1 %v2413_v33 }
 0x3b8   :  { %v3324_v14 = vpop.eup %3323 }
 0x3b9   :  { %v2291_v35 = vmul.f32 %v4020_v1, %v3324_v14 }
 0x3bb   :  { %v2294_v61 = vmul.f32 %v2291_v35, %v2202_v53  ;;  %v2321_v16 = vpack.c.bf16 %v2291_v35, %v2291_v35 }
 0x3bd   :  { %v2300_v39 = vrot.slane %v2294_v61, 7  ;;  %v2337_v17 = vpack.i.b16 %v2321_v16, %v2321_v16 }
 0x3be   :  { %2637 = vmatmul.mubr.bf16.gmra.mxu1 %v2412_v7 }
 0x3bf   :  { %v2306_v22 = vsub.f32 %v4020_v1, %v2300_v39  ;;  %2644 = vmatprep.mubr.bf16.mxu1 %v2416_v42  ;;  %v2342_v62 = vrot.slane %v2337_v17, %v4227_v58 }
 0x3c1   :  { %v2357_v59 = vpack.c.bf16 %v2306_v22, %v2306_v22  ;;  %v2345_v1 = vmul.bf16 %v2342_v62, %v2309_v26  ;;  %v2348_v53 = vmul.bf16 %v2342_v62, %v2312_v40  ;;  %v2351_v11 = vmul.bf16 %v2342_v62, %v2315_v51 }
 0x3c2   :  { %v2354_v47 = vmul.bf16 %v2342_v62, %v2318_v15 }
 0x3c3   :  { %v2375_v45 = vshrl.u32 %v2357_v59, 16 }
 0x3c5   :  { %v2376_v6 = vpack.i.b16 %v2375_v45, %v2375_v45 }
 0x3c6   :  { %2645 = vmatmul.mubr.bf16.gmra.mxu1 %v2415_v32 }
 0x3c7   :  { %v2381_v21 = vrot.slane %v2376_v6, %v4227_v58 }
 0x3c9   :  { %v2384_v28 = vadd.bf16 %v2381_v21, %v2345_v1  ;;  %v2387_v19 = vadd.bf16 %v2381_v21, %v2348_v53  ;;  %v2390_v37 = vadd.bf16 %v2381_v21, %v2351_v11  ;;  %v2393_v48 = vadd.bf16 %v2381_v21, %v2354_v47 }
 0x3cb   :  { %v2396_v49 = vmul.bf16 1045249613, %v2384_v28  ;;  %v2399_v38 = vmul.bf16 1045249613, %v2387_v19  ;;  %v2402_v31 = vmul.bf16 1045249613, %v2390_v37 }
 0x3cc   :  { %v2405_v58 = vmul.bf16 1045249613, %v2393_v48 }
 0x3cd   :  { %v2408_v30 = vmax.bf16 %v2396_v49, %v2384_v28  ;;  %v2411_v25 = vmax.bf16 %v2399_v38, %v2387_v19  ;;  %v2414_v23 = vmax.bf16 %v2402_v31, %v2390_v37 }
 0x3ce   :  { %v2417_v29 = vmax.bf16 %v2405_v58, %v2393_v48 }
 0x3cf   :  { %3106 = vmatprep.mubr.msk.bf16.mxu0 %vm299_vm2, %v2408_v30 }
 0x3d0   :  { %3107 = vmatmul.mubr.msk.bf16.vlgmr.msra.gmra.mxu0 %vm299_vm2, %v2411_v25 }
 0x3d1   :  { %3110 = vmatprep.mubr.msk.bf16.mxu0 %vm299_vm2, %v2414_v23 }
 0x3d8   :  { %3111 = vmatmul.mubr.msk.bf16.gmra.mxu0 %vm299_vm2, %v2417_v29 }
 0x46e   :  { %v3029_v24 = vpop.f32.mrf.mxu1 }
 0x470   :  { %v3030_v20 = vpop.f32.mrf.mxu1 }
 0x471   :  { %v3031_v57 = vadd.f32 %v3030_v20, %v3029_v24 }
 0x472   :  { %v3032_v18 = vpop.f32.mrf.mxu1 }
 0x473   :  { %v2623_v35 = vadd.f32 %v3031_v57, %v2459_v36 }
 0x474   :  { %v3033_v46 = vpop.f32.mrf.mxu1 }
 0x475   :  { %v3034_v14 = vadd.f32 %v3033_v46, %v3032_v18 }
 0x476   :  { %v3035_v52 = vpop.f32.mrf.mxu1 }
 0x477   :  { %v2626_v42 = vadd.f32 %v3034_v14, %v2459_v36 }
 0x478   :  { %v3036_v13 = vpop.f32.mrf.mxu1 }
 0x479   :  { %v3037_v43 = vadd.f32 %v3036_v13, %v3035_v52 }
 0x47a   :  { %v3038_v10 = vpop.f32.mrf.mxu1 }
 0x47b   :  { %v2631_v9 = vadd.f32 %v3037_v43, %v2459_v36 }
 0x47c   :  { %v3039_v56 = vpop.f32.mrf.mxu1 }
 0x47d   :  { %v3040_v4 = vadd.f32 %v3039_v56, %v3038_v10 }
 0x47e   :  { %v3041_v5 = vpop.f32.mrf.mxu1 }
 0x47f   :  { %v2634_v16 = vadd.f32 %v3040_v4, %v2459_v36 }
 0x480   :  { %v3042_v55 = vpop.f32.mrf.mxu1 }
 0x481   :  { %v3043_v12 = vadd.f32 %v3042_v55, %v3041_v5 }
 0x482   :  { %v3044_v50 = vpop.f32.mrf.mxu1 }
 0x483   :  { %v2639_v32 = vadd.f32 %v3043_v12, %v2459_v36 }
 0x484   :  { %v3045_v27 = vpop.f32.mrf.mxu1 }
 0x485   :  { %v3046_v62 = vadd.f32 %v3045_v27, %v3044_v50 }
 0x486   :  { %v3047_v2 = vpop.f32.mrf.mxu1 }
 0x487   :  { %v2642_v21 = vadd.f32 %v3046_v62, %v2459_v36 }
 0x488   :  { %v3048_v41 = vpop.f32.mrf.mxu1 }
 0x489   :  { %v3049_v44 = vadd.f32 %v3048_v41, %v3047_v2 }
 0x48a   :  { %v3050_v33 = vpop.f32.mrf.mxu1 }
 0x48b   :  { %v2647_v8 = vadd.f32 %v3049_v44, %v2459_v36 }
 0x48c   :  { %v3051_v7 = vpop.f32.mrf.mxu1 }
 0x48d   :  { %v3052_v54 = vadd.f32 %v3051_v7, %v3050_v33 }
 0x48f   :  { %v2650_v51 = vadd.f32 %v3052_v54, %v2459_v36 }
 0x490   :  { %v3108_v60 = vpop.f32.mrf.mxu0 }
 0x491   :  { %v2696_v63 = vadd.f32 %v3108_v60, %v2631_v9 }
 0x492   :  { %v2687_v0 = vpop.f32.mrf.mxu0 }
 0x493   :  { %2720 = vst [vmem:[#allocation8 + $0x10] sm:$0xff] %v2696_v63  ;;  %v2688_v61 = vadd.f32 %v2687_v0, %v2623_v35 }
 0x494   :  { %v3109_v3 = vpop.f32.mrf.mxu0 }
 0x495   :  { %2718 = vst [vmem:[#allocation8] sm:$0xff] %v2688_v61  ;;  %v2699_v39 = vadd.f32 %v3109_v3, %v2634_v16 }
 0x496   :  { %v2690_v22 = vpop.f32.mrf.mxu0 }
 0x497   :  { %2721 = vst [vmem:[#allocation8 + $0x18] sm:$0xff] %v2699_v39  ;;  %v2691_v17 = vadd.f32 %v2690_v22, %v2626_v42 }
 0x498   :  { %v3112_v59 = vpop.f32.mrf.mxu0 }
 0x499   :  { %2719 = vst [vmem:[#allocation8 + $0x8] sm:$0xff] %v2691_v17  ;;  %v2712_v45 = vadd.f32 %v3112_v59, %v2647_v8 }
 0x49a   :  { %v2703_v26 = vpop.f32.mrf.mxu0 }
 0x49b   :  { %2724 = vst [vmem:[#allocation8 + $0x30] sm:$0xff] %v2712_v45  ;;  %v2704_v40 = vadd.f32 %v2703_v26, %v2639_v32 }
 0x49c   :  { %v3113_v6 = vpop.f32.mrf.mxu0 }
 0x49d   :  { %2722 = vst [vmem:[#allocation8 + $0x20] sm:$0xff] %v2704_v40  ;;  %v2715_v1 = vadd.f32 %v3113_v6, %v2650_v51 }
 0x49e   :  { %v2706_v53 = vpop.f32.mrf.mxu0 }
 0x49f   :  { %2725 = vst [vmem:[#allocation8 + $0x38] sm:$0xff] %v2715_v1  ;;  %v2707_v11 = vadd.f32 %v2706_v53, %v2642_v21 }
 0x4a1   :  { %2723 = vst [vmem:[#allocation8 + $0x28] sm:$0xff] %v2707_v11 }
 0x4a2   :  { %3399 = shalt.err (!%p3396_p5)
}
 0x4a3   :  { %s3423_s26 = smov 128   ;;  %s3424_s27 = smov 8  }
 0x4a4   :  { %2737 = dma.vmem_to_hbm [thread:$0]  %s2732_s24, 1024, %s4280_s6, [#allocation4], %s3423_s26, %s3423_s26, %s3424_s27  }
 0x4a5   :  { %3412 = dma.done.wait [#allocation4], 1024  }
 0x4a6   :  { %3413 = vsyncadd [#allocation4], 4294966272 }
 0x4a7   :  { %2741 = vsyncpa [#allocation3], 1 }
 0x4a8   :  { %2742 = vsyncpa [#allocation6], 1 }
 0x4a9   :  { %2743 = vsyncpa [#allocation4], 1 }

</bundles_post_ra>
